<compile_context>
chip_gen: v5e
topology: v5e:2x2
jax: 0.10.0
libtpu: 0.0.40
codegen_flags: <defaults>
</compile_context>

<pallas_src>
import numpy as np

import jax
import jax.numpy as jnp
from jax.experimental import pallas as pl
from jax.experimental.pallas import tpu as pltpu

LEAKY_SLOPE = 0.01     # nn.LeakyReLU default
BN_EPS = 1e-5          # nn.BatchNorm2d default


def _leaky(x):
    return jnp.where(x > 0, x, LEAKY_SLOPE * x)


# ----------------------------- Pallas kernels -----------------------------

def _conv1_stats_kernel(p26_ref, w26_ref, psum_ref, psq_ref):
    """pan_net.conv1 (1->C1, 3x3 circular) BN(C1) batch-stat sums.
    p26_ref: (1, 26, T) bf16 = 25 circular 5x5 taps of pan + a constant-1 bias row.
    w26_ref: (C1, 26) f32  = conv1 weights at the center shift, conv bias in column 25.
    Partials accumulate in the resident output block across the tile ("arbitrary") axis,
    so only one (C1, 1) store happens per batch.  conv1 itself never hits HBM."""
    @pl.when(pl.program_id(1) == 0)
    def _():
        psum_ref[...] = jnp.zeros_like(psum_ref)
        psq_ref[...] = jnp.zeros_like(psq_ref)

    p = p26_ref[0].astype(jnp.float32)                                # (26, T)
    z = jnp.dot(w26_ref[...], p, preferred_element_type=jnp.float32)  # (C1, T)
    psum_ref[0] += jnp.sum(z, axis=1, keepdims=True)
    psq_ref[0] += jnp.sum(z * z, axis=1, keepdims=True)


def _pan_conv2_kernel(b2_ref, p26_ref, a_ref, w2_ref, out_ref):
    """pan_net.conv2 (C1->1, 3x3 circular).  The 9 spatially shifted, BN1-folded,
    leaky-activated conv1 maps are recomputed one shift at a time from the 5x5 pan taps
    (live intermediate (C1, T), never (9*C1, T)).  BN1 affine + conv1 bias are pre-folded
    into a_ref (shift routed through the constant-1 row of the tap slab)."""
    p = p26_ref[0].astype(jnp.float32)                                # (26, T)
    acc = jnp.zeros((1, out_ref.shape[2]), jnp.float32)
    for s in range(9):                                                # short unrolled loop
        z = jnp.dot(a_ref[s], p, preferred_element_type=jnp.float32)  # (C1, T)
        h = _leaky(z)
        acc = acc + jnp.dot(w2_ref[s], h, preferred_element_type=jnp.float32)
    out_ref[0] = acc + b2_ref[0]


def _fuse_kernel(scal_ref, p2pat_ref, c2_ref, braw_ref, wmp_ref, bmp_ref,
                 scb_ref, shb_ref, out_ref):
    """pan_abunstd fuse.  The BN(1) affine of the pan branch is folded into wmp/bmp
    (raw conv2 taps are consumed directly); the deconv branch's BN(E) affine + LeakyReLU
    is applied in-kernel; the multiply/plus 1->E convs are one (2E x 9) matmul; std gate;
    residual tail factored as uw*(mult*abun + plus) + abun."""
    w1 = scal_ref[0]
    w2 = scal_ref[1]
    b1 = scal_ref[2]
    b2 = scal_ref[3]
    s2 = scal_ref[4]      # BN(1) scale of the processed pan (center value only)
    t2 = scal_ref[5]      # BN(1) shift

    taps = p2pat_ref[0].astype(jnp.float32)                           # (9, T) raw conv2 taps
    mp = _leaky(jnp.dot(wmp_ref[...], taps, preferred_element_type=jnp.float32)
                + bmp_ref[...])                                        # (2E, T): [mult ; plus]
    e = braw_ref.shape[1]
    mult = mp[:e, :]
    plus = mp[e:, :]

    abun_up = _leaky(braw_ref[0].astype(jnp.float32) * scb_ref[...] + shb_ref[...])  # (E, T)

    pc = c2_ref[0] * s2 + t2                                           # (1, T): pan_p (BN'd)

    # torch.std(abun, dim=1, keepdim=True): unbiased (ddof=1) over channels.
    mu = jnp.mean(abun_up, axis=0, keepdims=True)
    var = jnp.sum((abun_up - mu) ** 2, axis=0, keepdims=True) / (e - 1)
    std = jnp.sqrt(var)

    uw = (jax.nn.sigmoid(jnp.maximum(pc - w1 * std - b1, 0.0))
          + jax.nn.sigmoid(jnp.maximum(w2 * std + b2 - pc, 0.0)))

    out_ref[0] = uw * (mult * abun_up + plus) + abun_up


# ----------------------------- glue helpers -----------------------------

def _bicubic_weights_1d(in_size, out_size):
    """1-D bicubic interpolation matrix matching nn.Upsample(mode='bicubic',
    align_corners=False), A=-0.75, border-replicated taps.  (out_size, in_size)."""
    A = -0.75

    def c1(x):
        return ((A + 2.0) * x - (A + 3.0)) * x * x + 1.0

    def c2(x):
        return ((A * x - 5.0 * A) * x + 8.0 * A) * x - 4.0 * A

    scale = in_size / out_size
    m = np.zeros((out_size, in_size), np.float64)
    for i in range(out_size):
        real = scale * (i + 0.5) - 0.5
        idx = int(np.floor(real))
        t = real - idx
        co = (c2(t + 1.0), c1(t), c1(1.0 - t), c2(2.0 - t))
        for k in range(4):
            j = min(max(idx - 1 + k, 0), in_size - 1)
            m[i, j] += co[k]
    return m.astype(np.float32)


def _pick_lane_tile(hw, cap=2048):
    """Largest multiple of 128 that divides hw (capped); fall back to full extent."""
    t = min(cap, (hw // 128) * 128)
    while t >= 128:
        if hw % t == 0:
            return t
        t -= 128
    return hw


def _shifted_cols(sh, sw):
    """5x5 tap indices hit by a 3x3 conv at spatial shift (sh, sw) in {0,1,2}^2."""
    return np.array([(sh + kh) * 5 + (sw + kw)
                     for kh in range(3) for kw in range(3)], dtype=np.int32)


# ----------------------------- parameters -----------------------------

def init_params(key, endmember_num=32, mid_channel=32):
    E, C1 = endmember_num, mid_channel
    ks = jax.random.split(key, 10)
    f = jnp.float32
    return {
        # deconv: simple_net(E, E, kernel=1) = Conv2d(E,E,1) + BN(E) + LeakyReLU
        "dec_w": jax.random.normal(ks[0], (E, E, 1, 1), f) * 0.15,
        "dec_b": jax.random.normal(ks[1], (E,), f) * 0.05,
        "dec_gamma": jnp.ones((E,), f),
        "dec_beta": jnp.zeros((E,), f),
        # pan_net.conv1: Conv2d(1, 32, 3, circular) + BN(32) + LeakyReLU
        "p1_w": jax.random.normal(ks[2], (C1, 1, 3, 3), f) * 0.2,
        "p1_b": jax.random.normal(ks[3], (C1,), f) * 0.05,
        "p1_gamma": jnp.ones((C1,), f),
        "p1_beta": jnp.zeros((C1,), f),
        # pan_net.conv2: Conv2d(32, 1, 3, circular) + BN(1)
        "p2_w": jax.random.normal(ks[4], (1, C1, 3, 3), f) * 0.1,
        "p2_b": jax.random.normal(ks[5], (1,), f) * 0.05,
        "p2_gamma": jnp.ones((1,), f),
        "p2_beta": jnp.zeros((1,), f),
        # pan_abunstd: multiply_weight / plus_weight = Conv2d(1, E, 3, circular) + LeakyReLU
        "mult_w": jax.random.normal(ks[6], (E, 1, 3, 3), f) * 0.2,
        "mult_b": jax.random.normal(ks[7], (E,), f) * 0.05,
        "plus_w": jax.random.normal(ks[8], (E, 1, 3, 3), f) * 0.2,
        "plus_b": jax.random.normal(ks[9], (E,), f) * 0.05,
    }


# ----------------------------- forward -----------------------------

@jax.jit
def res_dense_net_forward(params, w1, w2, b1, b2, abun, pan):
    f32 = jnp.float32
    bf16 = jnp.bfloat16
    N, E, Ha, Wa = abun.shape
    Nn, Cp, Hp, Wp = pan.shape
    assert Nn == N and Cp == 1
    # TODO(synk): pan_net stride0/stride1 > 1 (pan_size > ratio*in_size) path not
    # implemented; this assumes the pan sits at the fused (ratio*in_size) resolution.
    assert Hp % Ha == 0 and Wp % Wa == 0
    HW = Hp * Wp
    P = N * HW
    C1 = params["p1_w"].shape[0]

    lane_tile = _pick_lane_tile(HW)
    n_tiles = HW // lane_tile
    grid = (N, n_tiles)
    vmem_cap = 48 * 1024 * 1024                     # headroom under v7x's 64 MiB physical
    par_pp = pltpu.CompilerParams(dimension_semantics=("parallel", "parallel"),
                                  vmem_limit_bytes=vmem_cap)
    par_pa = pltpu.CompilerParams(dimension_semantics=("parallel", "arbitrary"),
                                  vmem_limit_bytes=vmem_cap)

    # ---- glue: 5x5 circular taps of the single-channel pan + constant-1 bias row ----
    pan2d = pan[:, 0].astype(f32)                                     # (N, Hp, Wp)
    taps25 = [jnp.roll(pan2d, shift=(-dh, -dw), axis=(1, 2))
              for dh in range(-2, 3) for dw in range(-2, 3)]
    pan26 = jnp.concatenate(
        [jnp.stack(taps25, axis=1).reshape(N, 25, HW),
         jnp.ones((N, 1, HW), f32)], axis=1).astype(bf16)             # (N, 26, HW) bf16
    # TODO(synk): build this 26-row tap slab inside a Pallas kernel (halo-window DMA) to
    # also avoid the 26x-expanded HBM write of the pan image.

    w1m = params["p1_w"].reshape(C1, 9).astype(f32)                   # [c, kh*3+kw]
    b1v = params["p1_b"].astype(f32)                                  # (C1,)

    # kernel-1 matrix: center-shift conv1 weights, conv bias routed via the 1-row.
    w26_center = (jnp.zeros((C1, 26), f32)
                  .at[:, _shifted_cols(1, 1)].set(w1m)
                  .at[:, 25].set(b1v))

    # ---- kernel 1: BN(C1) batch statistics of conv1 (conv1 never hits HBM) ----
    psum1, psq1 = pl.pallas_call(
        _conv1_stats_kernel,
        out_shape=(jax.ShapeDtypeStruct((N, C1, 1), f32),
                   jax.ShapeDtypeStruct((N, C1, 1), f32)),
        grid=grid,
        in_specs=[
            pl.BlockSpec((1, 26, lane_tile), lambda n, i: (n, 0, i)),
            pl.BlockSpec((C1, 26), lambda n, i: (0, 0)),
        ],
        out_specs=(pl.BlockSpec((1, C1, 1), lambda n, i: (n, 0, 0)),
                   pl.BlockSpec((1, C1, 1), lambda n, i: (n, 0, 0))),
        compiler_params=par_pa,
    )(pan26, w26_center)

    mean1 = jnp.sum(psum1, axis=0) / P                                # (C1, 1)
    var1 = jnp.maximum(jnp.sum(psq1, axis=0) / P - mean1 * mean1, 0.0)
    scale1 = params["p1_gamma"].reshape(C1, 1) / jnp.sqrt(var1 + BN_EPS)
    shift1 = params["p1_beta"].reshape(C1, 1) - mean1 * scale1

    # Fold BN1 affine + conv1 bias into the per-shift conv1 matrices (trace-thin ops).
    w1m_s = scale1 * w1m                                              # (C1, 9)
    col25 = scale1[:, 0] * b1v + shift1[:, 0]                         # (C1,)
    mats = []
    for sh in range(3):
        for sw in range(3):
            m = (jnp.zeros((C1, 26), f32)
                 .at[:, _shifted_cols(sh, sw)].set(w1m_s)
                 .at[:, 25].set(col25))
            mats.append(m)
    a_fold = jnp.stack(mats, axis=0)                                  # (9, C1, 26)
    w2rows = params["p2_w"].reshape(C1, 9).T.reshape(9, 1, C1).astype(f32)
    b2smem = params["p2_b"].astype(f32)                               # (1,) -> SMEM

    # ---- kernel 2: pan_net.conv2 (leaky(BN(conv1)) recomputed shift-by-shift) ----
    conv2_raw = pl.pallas_call(
        _pan_conv2_kernel,
        out_shape=jax.ShapeDtypeStruct((N, 1, HW), f32),
        grid=grid,
        in_specs=[
            pl.BlockSpec(memory_space=pltpu.MemorySpace.SMEM),
            pl.BlockSpec((1, 26, lane_tile), lambda n, i: (n, 0, i)),
            pl.BlockSpec((9, C1, 26), lambda n, i: (0, 0, 0)),
            pl.BlockSpec((9, 1, C1), lambda n, i: (0, 0, 0)),
        ],
        out_specs=pl.BlockSpec((1, 1, lane_tile), lambda n, i: (n, 0, i)),
        compiler_params=par_pp,
    )(b2smem, pan26, a_fold, w2rows)

    # BN over the single pan channel: tiny tensor -> stats in the wrapper.
    mean2 = jnp.mean(conv2_raw)
    var2 = jnp.maximum(jnp.mean(conv2_raw * conv2_raw) - mean2 * mean2, 0.0)
    scale2 = params["p2_gamma"][0] / jnp.sqrt(var2 + BN_EPS)
    shift2 = params["p2_beta"][0] - mean2 * scale2

    # 3x3 circular taps of the RAW conv2 output (BN(1) affine folded into wmp/bmp below),
    # stored bf16; matmul accumulation stays f32 in-kernel.
    c2img = conv2_raw.reshape(N, Hp, Wp)
    taps9 = [jnp.roll(c2img, shift=(1 - kh, 1 - kw), axis=(1, 2))
             for kh in range(3) for kw in range(3)]
    p2pat = jnp.stack(taps9, axis=1).reshape(N, 9, HW).astype(bf16)   # (N, 9, HW) bf16

    # ---- deconv branch: 1x1 conv folded at LOW resolution + separable bicubic upsample
    #      (two small matmuls, no Kronecker matrix).  BN(E) stats computed exactly at low
    #      resolution via column-sum / Gram matrices -> no stats pass over braw. ----
    Rh = jnp.asarray(_bicubic_weights_1d(Ha, Hp), f32)                # (Hp, Ha)
    Cw = jnp.asarray(_bicubic_weights_1d(Wa, Wp), f32)                # (Wp, Wa)
    wc = params["dec_w"].reshape(E, E).astype(f32)
    bc = params["dec_b"].astype(f32)                                  # (E,)

    x_lo = jnp.einsum("fe,nehw->nfhw", wc, abun.astype(f32))          # conv folded, no bias
    tmp = jnp.einsum("nfhw,Ww->nfhW", x_lo, Cw)                       # (N, E, Ha, Wp)
    braw = jnp.einsum("Hh,nfhW->nfHW", Rh, tmp).reshape(N, E, HW).astype(bf16)

    rsum = jnp.sum(Rh, axis=0)                                        # (Ha,)
    csum = jnp.sum(Cw, axis=0)                                        # (Wa,)
    GR = Rh.T @ Rh                                                    # (Ha, Ha)
    GC = Cw.T @ Cw                                                    # (Wa, Wa)
    s1 = jnp.einsum("nfhw,h,w->f", x_lo, rsum, csum)                  # sum(braw_nobias)
    sq = jnp.einsum("nfhw,hH,wW,nfHW->f", x_lo, GR, GC, x_lo)         # sum(braw_nobias^2)
    meanb = s1 / P + bc
    varb = jnp.maximum(sq / P - (s1 / P) ** 2, 0.0)
    scaleb_v = params["dec_gamma"] / jnp.sqrt(varb + BN_EPS)          # (E,)
    shiftb_v = params["dec_beta"] - meanb * scaleb_v + scaleb_v * bc  # conv bias folded in
    scaleb = scaleb_v.reshape(E, 1)
    shiftb = shiftb_v.reshape(E, 1)

    # ---- kernel 3: pan_abunstd fuse (BN affines + LeakyReLU + std gate + residual) ----
    wmp_raw = jnp.concatenate([params["mult_w"].reshape(E, 9),
                               params["plus_w"].reshape(E, 9)], axis=0).astype(f32)  # (2E, 9)
    wmp = wmp_raw * scale2                                            # fold BN(1) scale
    bmp = (jnp.concatenate([params["mult_b"], params["plus_b"]])
           .reshape(2 * E, 1).astype(f32)
           + shift2 * jnp.sum(wmp_raw, axis=1, keepdims=True))        # fold BN(1) shift
    scal = jnp.stack([jnp.asarray(w1, f32), jnp.asarray(w2, f32),
                      jnp.asarray(b1, f32), jnp.asarray(b2, f32),
                      scale2, shift2]).astype(f32)                    # (6,) -> SMEM

    out = pl.pallas_call(
        _fuse_kernel,
        out_shape=jax.ShapeDtypeStruct((N, E, HW), f32),
        grid=grid,
        in_specs=[
            pl.BlockSpec(memory_space=pltpu.MemorySpace.SMEM),
            pl.BlockSpec((1, 9, lane_tile), lambda n, i: (n, 0, i)),
            pl.BlockSpec((1, 1, lane_tile), lambda n, i: (n, 0, i)),
            pl.BlockSpec((1, E, lane_tile), lambda n, i: (n, 0, i)),
            pl.BlockSpec((2 * E, 9), lambda n, i: (0, 0)),
            pl.BlockSpec((2 * E, 1), lambda n, i: (0, 0)),
            pl.BlockSpec((E, 1), lambda n, i: (0, 0)),
            pl.BlockSpec((E, 1), lambda n, i: (0, 0)),
        ],
        out_specs=pl.BlockSpec((1, E, lane_tile), lambda n, i: (n, 0, i)),
        compiler_params=par_pp,
    )(scal, p2pat, conv2_raw, braw, wmp, bmp, scaleb, shiftb)

    return out.reshape(N, E, Hp, Wp)                                  # already NCHW


if __name__ == "__main__":
    key = jax.random.PRNGKey(0)
    kp, ka, kpan = jax.random.split(key, 3)

    # res_dense_net(in_size=4, pan_size=16, endmember_num=32, ratio=4) -> stride0=stride1=1.
    N, E = 2, 32
    Ha = Wa = 4
    ratio = 4
    Hp = Wp = Ha * ratio

    params = init_params(kp, endmember_num=E, mid_channel=32)
    abun = jax.random.uniform(ka, (N, E, Ha, Wa), jnp.float32)
    pan = jax.random.uniform(kpan, (N, 1, Hp, Wp), jnp.float32)
    w1 = jnp.float32(0.5)
    w2 = jnp.float32(0.75)
    b1 = jnp.float32(0.1)
    b2 = jnp.float32(-0.05)

    out = res_dense_net_forward(params, w1, w2, b1, b2, abun, pan)
    jax.block_until_ready(out)
    assert out.shape == (N, E, Hp, Wp) and out.dtype == jnp.float32
    assert bool(jnp.all(jnp.isfinite(out)))
    print("KERNEL_OK")
</pallas_src>

<mosaic_0001>
module attributes {stable_mosaic.version = 11 : i64} {
  func.func @_conv1_stats_kernel(%arg0: i32, %arg1: i32, %arg2: memref<1x26x256xbf16, #tpu.memory_space<vmem>>, %arg3: memref<32x26xf32, #tpu.memory_space<vmem>>, %arg4: memref<1x32x1xf32, #tpu.memory_space<vmem>>, %arg5: memref<1x32x1xf32, #tpu.memory_space<vmem>>) attributes {dimension_semantics = [#tpu.dimension_semantics<parallel>, #tpu.dimension_semantics<arbitrary>], iteration_bounds = array<i64: 2, 1>, scalar_prefetch = 0 : i64, scratch_operands = 0 : i64, tpu.core_type = #tpu.core_type<tc>, window_params = [{transform_indices = @transform_0, window_bounds = array<i64: 1, 26, 256>}, {pipeline_mode = #tpu.pipeline_mode<synchronous>, transform_indices = @transform_1, window_bounds = array<i64: 32, 26>}, {transform_indices = @transform_2, window_bounds = array<i64: 1, 32, 1>}, {transform_indices = @transform_3, window_bounds = array<i64: 1, 32, 1>}]} {
    %c0_i32 = arith.constant 0 : i32
    %0 = arith.cmpi eq, %arg1, %c0_i32 : i32
    %1 = arith.extui %0 : i1 to i32
    %c0_i32_0 = arith.constant 0 : i32
    %2 = arith.cmpi ne, %1, %c0_i32_0 : i32
    scf.if %2 {
      %cst_19 = arith.constant 0.000000e+00 : f32
      %25 = vector.broadcast %cst_19 : f32 to vector<1x32x1xf32>
      %c0_20 = arith.constant 0 : index
      %c0_21 = arith.constant 0 : index
      %c0_22 = arith.constant 0 : index
      %26 = vector.load %arg4[%c0_20, %c0_21, %c0_22] : memref<1x32x1xf32, #tpu.memory_space<vmem>>, vector<1x32x1xf32>
      tpu.vector_store %arg4[%c0_20, %c0_21, %c0_22], %25 {strides = array<i32>} : memref<1x32x1xf32, #tpu.memory_space<vmem>>, vector<1x32x1xf32>,
      %cst_23 = arith.constant 0.000000e+00 : f32
      %27 = vector.broadcast %cst_23 : f32 to vector<1x32x1xf32>
      %c0_24 = arith.constant 0 : index
      %c0_25 = arith.constant 0 : index
      %c0_26 = arith.constant 0 : index
      %28 = vector.load %arg5[%c0_24, %c0_25, %c0_26] : memref<1x32x1xf32, #tpu.memory_space<vmem>>, vector<1x32x1xf32>
      tpu.vector_store %arg5[%c0_24, %c0_25, %c0_26], %27 {strides = array<i32>} : memref<1x32x1xf32, #tpu.memory_space<vmem>>, vector<1x32x1xf32>,
    } else {
    }
    %c0 = arith.constant 0 : index
    %c0_1 = arith.constant 0 : index
    %c0_2 = arith.constant 0 : index
    %3 = vector.load %arg2[%c0, %c0_1, %c0_2] : memref<1x26x256xbf16, #tpu.memory_space<vmem>>, vector<1x26x256xbf16>
    %4 = vector.shape_cast %3 : vector<1x26x256xbf16> to vector<26x256xbf16>
    %5 = arith.extf %4 : vector<26x256xbf16> to vector<26x256xf32>
    %c0_3 = arith.constant 0 : index
    %c0_4 = arith.constant 0 : index
    %6 = vector.load %arg3[%c0_3, %c0_4] : memref<32x26xf32, #tpu.memory_space<vmem>>, vector<32x26xf32>
    %cst = arith.constant dense<0.000000e+00> : vector<32x256xf32>
    %7 = tpu.matmul %6, %5, %cst {dimension_numbers = #tpu.dot_dimension_numbers<[1], [0], [0], [1], [0, 0, 1, 1], [], []>} : vector<32x26xf32>, vector<26x256xf32>, vector<32x256xf32> -> vector<32x256xf32>
    %c0_5 = arith.constant 0 : index
    %c0_6 = arith.constant 0 : index
    %c0_7 = arith.constant 0 : index
    %8 = vector.load %arg4[%c0_5, %c0_6, %c0_7] : memref<1x32x1xf32, #tpu.memory_space<vmem>>, vector<1x32x1xf32>
    %9 = vector.shape_cast %8 : vector<1x32x1xf32> to vector<32x1xf32>
    %cst_8 = arith.constant dense<0.000000e+00> : vector<32xf32>
    %10 = vector.multi_reduction <add>, %7, %cst_8 [1] : vector<32x256xf32> to vector<32xf32>
    %11 = vector.shape_cast %10 : vector<32xf32> to vector<32x1xf32>
    %12 = arith.addf %9, %11 : vector<32x1xf32>
    %c0_9 = arith.constant 0 : index
    %c0_10 = arith.constant 0 : index
    %c0_11 = arith.constant 0 : index
    %13 = vector.load %arg4[%c0_9, %c0_10, %c0_11] : memref<1x32x1xf32, #tpu.memory_space<vmem>>, vector<1x32x1xf32>
    %14 = vector.shape_cast %13 : vector<1x32x1xf32> to vector<32x1xf32>
    %15 = vector.shape_cast %12 : vector<32x1xf32> to vector<1x32x1xf32>
    tpu.vector_store %arg4[%c0_9, %c0_10, %c0_11], %15 {strides = array<i32>} : memref<1x32x1xf32, #tpu.memory_space<vmem>>, vector<1x32x1xf32>,
    %c0_12 = arith.constant 0 : index
    %c0_13 = arith.constant 0 : index
    %c0_14 = arith.constant 0 : index
    %16 = vector.load %arg5[%c0_12, %c0_13, %c0_14] : memref<1x32x1xf32, #tpu.memory_space<vmem>>, vector<1x32x1xf32>
    %17 = vector.shape_cast %16 : vector<1x32x1xf32> to vector<32x1xf32>
    %18 = arith.mulf %7, %7 : vector<32x256xf32>
    %cst_15 = arith.constant dense<0.000000e+00> : vector<32xf32>
    %19 = vector.multi_reduction <add>, %18, %cst_15 [1] : vector<32x256xf32> to vector<32xf32>
    %20 = vector.shape_cast %19 : vector<32xf32> to vector<32x1xf32>
    %21 = arith.addf %17, %20 : vector<32x1xf32>
    %c0_16 = arith.constant 0 : index
    %c0_17 = arith.constant 0 : index
    %c0_18 = arith.constant 0 : index
    %22 = vector.load %arg5[%c0_16, %c0_17, %c0_18] : memref<1x32x1xf32, #tpu.memory_space<vmem>>, vector<1x32x1xf32>
    %23 = vector.shape_cast %22 : vector<1x32x1xf32> to vector<32x1xf32>
    %24 = vector.shape_cast %21 : vector<32x1xf32> to vector<1x32x1xf32>
    tpu.vector_store %arg5[%c0_16, %c0_17, %c0_18], %24 {strides = array<i32>} : memref<1x32x1xf32, #tpu.memory_space<vmem>>, vector<1x32x1xf32>,
    return
  }
  func.func @transform_0(%arg0: i32, %arg1: i32) -> (i32, i32, i32) {
    %c0_i32 = arith.constant 0 : i32
    %c0_i32_0 = arith.constant 0 : i32
    return %arg0, %c0_i32, %arg1 : i32, i32, i32
  }
  func.func @transform_1(%arg0: i32, %arg1: i32) -> (i32, i32) {
    %c0_i32 = arith.constant 0 : i32
    %c0_i32_0 = arith.constant 0 : i32
    %c0_i32_1 = arith.constant 0 : i32
    return %c0_i32, %c0_i32_0 : i32, i32
  }
  func.func @transform_2(%arg0: i32, %arg1: i32) -> (i32, i32, i32) {
    %c0_i32 = arith.constant 0 : i32
    %c0_i32_0 = arith.constant 0 : i32
    %c0_i32_1 = arith.constant 0 : i32
    return %arg0, %c0_i32, %c0_i32_0 : i32, i32, i32
  }
  func.func @transform_3(%arg0: i32, %arg1: i32) -> (i32, i32, i32) {
    %c0_i32 = arith.constant 0 : i32
    %c0_i32_0 = arith.constant 0 : i32
    %c0_i32_1 = arith.constant 0 : i32
    return %arg0, %c0_i32, %c0_i32_0 : i32, i32, i32
  }
}

module attributes {stable_mosaic.version = 11 : i64} {
  func.func @_pan_conv2_kernel(%arg0: i32, %arg1: i32, %arg2: memref<1xf32, #tpu.memory_space<smem>>, %arg3: memref<1x26x256xbf16, #tpu.memory_space<vmem>>, %arg4: memref<9x32x26xf32, #tpu.memory_space<vmem>>, %arg5: memref<9x1x32xf32, #tpu.memory_space<vmem>>, %arg6: memref<1x1x256xf32, #tpu.memory_space<vmem>>) attributes {dimension_semantics = [#tpu.dimension_semantics<parallel>, #tpu.dimension_semantics<parallel>], iteration_bounds = array<i64: 2, 1>, scalar_prefetch = 0 : i64, scratch_operands = 0 : i64, tpu.core_type = #tpu.core_type<tc>, window_params = [{transform_indices = @transform_0, window_bounds = array<i64: 1>}, {transform_indices = @transform_1, window_bounds = array<i64: 1, 26, 256>}, {pipeline_mode = #tpu.pipeline_mode<synchronous>, transform_indices = @transform_2, window_bounds = array<i64: 9, 32, 26>}, {pipeline_mode = #tpu.pipeline_mode<synchronous>, transform_indices = @transform_3, window_bounds = array<i64: 9, 1, 32>}, {transform_indices = @transform_4, window_bounds = array<i64: 1, 1, 256>}]} {
    %c0 = arith.constant 0 : index
    %c0_0 = arith.constant 0 : index
    %c0_1 = arith.constant 0 : index
    %0 = vector.load %arg3[%c0, %c0_0, %c0_1] : memref<1x26x256xbf16, #tpu.memory_space<vmem>>, vector<1x26x256xbf16>
    %1 = vector.shape_cast %0 : vector<1x26x256xbf16> to vector<26x256xbf16>
    %2 = arith.extf %1 : vector<26x256xbf16> to vector<26x256xf32>
    %cst = arith.constant 0.000000e+00 : f32
    %3 = vector.broadcast %cst : f32 to vector<1x256xf32>
    %c0_2 = arith.constant 0 : index
    %c0_3 = arith.constant 0 : index
    %c0_4 = arith.constant 0 : index
    %4 = vector.load %arg4[%c0_2, %c0_3, %c0_4] : memref<9x32x26xf32, #tpu.memory_space<vmem>>, vector<1x32x26xf32>
    %5 = vector.shape_cast %4 : vector<1x32x26xf32> to vector<32x26xf32>
    %cst_5 = arith.constant dense<0.000000e+00> : vector<32x256xf32>
    %6 = tpu.matmul %5, %2, %cst_5 {dimension_numbers = #tpu.dot_dimension_numbers<[1], [0], [0], [1], [0, 0, 1, 1], [], []>} : vector<32x26xf32>, vector<26x256xf32>, vector<32x256xf32> -> vector<32x256xf32>
    %cst_6 = arith.constant 0.000000e+00 : f32
    %7 = vector.broadcast %cst_6 : f32 to vector<32x256xf32>
    %8 = arith.cmpf ogt, %6, %7 : vector<32x256xf32>
    %cst_7 = arith.constant 0.00999999977 : f32
    %9 = vector.broadcast %cst_7 : f32 to vector<32x256xf32>
    %10 = arith.mulf %9, %6 : vector<32x256xf32>
    %11 = arith.select %8, %6, %10 : vector<32x256xi1>, vector<32x256xf32>
    %c0_8 = arith.constant 0 : index
    %c0_9 = arith.constant 0 : index
    %c0_10 = arith.constant 0 : index
    %12 = vector.load %arg5[%c0_8, %c0_9, %c0_10] : memref<9x1x32xf32, #tpu.memory_space<vmem>>, vector<1x1x32xf32>
    %13 = vector.shape_cast %12 : vector<1x1x32xf32> to vector<1x32xf32>
    %cst_11 = arith.constant dense<0.000000e+00> : vector<1x256xf32>
    %14 = tpu.matmul %13, %11, %cst_11 {dimension_numbers = #tpu.dot_dimension_numbers<[1], [0], [0], [1], [0, 0, 1, 1], [], []>} : vector<1x32xf32>, vector<32x256xf32>, vector<1x256xf32> -> vector<1x256xf32>
    %15 = arith.addf %3, %14 : vector<1x256xf32>
    %c1 = arith.constant 1 : index
    %c0_12 = arith.constant 0 : index
    %c0_13 = arith.constant 0 : index
    %16 = vector.load %arg4[%c1, %c0_12, %c0_13] : memref<9x32x26xf32, #tpu.memory_space<vmem>>, vector<1x32x26xf32>
    %17 = vector.shape_cast %16 : vector<1x32x26xf32> to vector<32x26xf32>
    %cst_14 = arith.constant dense<0.000000e+00> : vector<32x256xf32>
    %18 = tpu.matmul %17, %2, %cst_14 {dimension_numbers = #tpu.dot_dimension_numbers<[1], [0], [0], [1], [0, 0, 1, 1], [], []>} : vector<32x26xf32>, vector<26x256xf32>, vector<32x256xf32> -> vector<32x256xf32>
    %cst_15 = arith.constant 0.000000e+00 : f32
    %19 = vector.broadcast %cst_15 : f32 to vector<32x256xf32>
    %20 = arith.cmpf ogt, %18, %19 : vector<32x256xf32>
    %cst_16 = arith.constant 0.00999999977 : f32
    %21 = vector.broadcast %cst_16 : f32 to vector<32x256xf32>
    %22 = arith.mulf %21, %18 : vector<32x256xf32>
    %23 = arith.select %20, %18, %22 : vector<32x256xi1>, vector<32x256xf32>
    %c1_17 = arith.constant 1 : index
    %c0_18 = arith.constant 0 : index
    %c0_19 = arith.constant 0 : index
    %24 = vector.load %arg5[%c1_17, %c0_18, %c0_19] : memref<9x1x32xf32, #tpu.memory_space<vmem>>, vector<1x1x32xf32>
    %25 = vector.shape_cast %24 : vector<1x1x32xf32> to vector<1x32xf32>
    %cst_20 = arith.constant dense<0.000000e+00> : vector<1x256xf32>
    %26 = tpu.matmul %25, %23, %cst_20 {dimension_numbers = #tpu.dot_dimension_numbers<[1], [0], [0], [1], [0, 0, 1, 1], [], []>} : vector<1x32xf32>, vector<32x256xf32>, vector<1x256xf32> -> vector<1x256xf32>
    %27 = arith.addf %15, %26 : vector<1x256xf32>
    %c2 = arith.constant 2 : index
    %c0_21 = arith.constant 0 : index
    %c0_22 = arith.constant 0 : index
    %28 = vector.load %arg4[%c2, %c0_21, %c0_22] : memref<9x32x26xf32, #tpu.memory_space<vmem>>, vector<1x32x26xf32>
    %29 = vector.shape_cast %28 : vector<1x32x26xf32> to vector<32x26xf32>
    %cst_23 = arith.constant dense<0.000000e+00> : vector<32x256xf32>
    %30 = tpu.matmul %29, %2, %cst_23 {dimension_numbers = #tpu.dot_dimension_numbers<[1], [0], [0], [1], [0, 0, 1, 1], [], []>} : vector<32x26xf32>, vector<26x256xf32>, vector<32x256xf32> -> vector<32x256xf32>
    %cst_24 = arith.constant 0.000000e+00 : f32
    %31 = vector.broadcast %cst_24 : f32 to vector<32x256xf32>
    %32 = arith.cmpf ogt, %30, %31 : vector<32x256xf32>
    %cst_25 = arith.constant 0.00999999977 : f32
    %33 = vector.broadcast %cst_25 : f32 to vector<32x256xf32>
    %34 = arith.mulf %33, %30 : vector<32x256xf32>
    %35 = arith.select %32, %30, %34 : vector<32x256xi1>, vector<32x256xf32>
    %c2_26 = arith.constant 2 : index
    %c0_27 = arith.constant 0 : index
    %c0_28 = arith.constant 0 : index
    %36 = vector.load %arg5[%c2_26, %c0_27, %c0_28] : memref<9x1x32xf32, #tpu.memory_space<vmem>>, vector<1x1x32xf32>
    %37 = vector.shape_cast %36 : vector<1x1x32xf32> to vector<1x32xf32>
    %cst_29 = arith.constant dense<0.000000e+00> : vector<1x256xf32>
    %38 = tpu.matmul %37, %35, %cst_29 {dimension_numbers = #tpu.dot_dimension_numbers<[1], [0], [0], [1], [0, 0, 1, 1], [], []>} : vector<1x32xf32>, vector<32x256xf32>, vector<1x256xf32> -> vector<1x256xf32>
    %39 = arith.addf %27, %38 : vector<1x256xf32>
    %c3 = arith.constant 3 : index
    %c0_30 = arith.constant 0 : index
    %c0_31 = arith.constant 0 : index
    %40 = vector.load %arg4[%c3, %c0_30, %c0_31] : memref<9x32x26xf32, #tpu.memory_space<vmem>>, vector<1x32x26xf32>
    %41 = vector.shape_cast %40 : vector<1x32x26xf32> to vector<32x26xf32>
    %cst_32 = arith.constant dense<0.000000e+00> : vector<32x256xf32>
    %42 = tpu.matmul %41, %2, %cst_32 {dimension_numbers = #tpu.dot_dimension_numbers<[1], [0], [0], [1], [0, 0, 1, 1], [], []>} : vector<32x26xf32>, vector<26x256xf32>, vector<32x256xf32> -> vector<32x256xf32>
    %cst_33 = arith.constant 0.000000e+00 : f32
    %43 = vector.broadcast %cst_33 : f32 to vector<32x256xf32>
    %44 = arith.cmpf ogt, %42, %43 : vector<32x256xf32>
    %cst_34 = arith.constant 0.00999999977 : f32
    %45 = vector.broadcast %cst_34 : f32 to vector<32x256xf32>
    %46 = arith.mulf %45, %42 : vector<32x256xf32>
    %47 = arith.select %44, %42, %46 : vector<32x256xi1>, vector<32x256xf32>
    %c3_35 = arith.constant 3 : index
    %c0_36 = arith.constant 0 : index
    %c0_37 = arith.constant 0 : index
    %48 = vector.load %arg5[%c3_35, %c0_36, %c0_37] : memref<9x1x32xf32, #tpu.memory_space<vmem>>, vector<1x1x32xf32>
    %49 = vector.shape_cast %48 : vector<1x1x32xf32> to vector<1x32xf32>
    %cst_38 = arith.constant dense<0.000000e+00> : vector<1x256xf32>
    %50 = tpu.matmul %49, %47, %cst_38 {dimension_numbers = #tpu.dot_dimension_numbers<[1], [0], [0], [1], [0, 0, 1, 1], [], []>} : vector<1x32xf32>, vector<32x256xf32>, vector<1x256xf32> -> vector<1x256xf32>
    %51 = arith.addf %39, %50 : vector<1x256xf32>
    %c4 = arith.constant 4 : index
    %c0_39 = arith.constant 0 : index
    %c0_40 = arith.constant 0 : index
    %52 = vector.load %arg4[%c4, %c0_39, %c0_40] : memref<9x32x26xf32, #tpu.memory_space<vmem>>, vector<1x32x26xf32>
    %53 = vector.shape_cast %52 : vector<1x32x26xf32> to vector<32x26xf32>
    %cst_41 = arith.constant dense<0.000000e+00> : vector<32x256xf32>
    %54 = tpu.matmul %53, %2, %cst_41 {dimension_numbers = #tpu.dot_dimension_numbers<[1], [0], [0], [1], [0, 0, 1, 1], [], []>} : vector<32x26xf32>, vector<26x256xf32>, vector<32x256xf32> -> vector<32x256xf32>
    %cst_42 = arith.constant 0.000000e+00 : f32
    %55 = vector.broadcast %cst_42 : f32 to vector<32x256xf32>
    %56 = arith.cmpf ogt, %54, %55 : vector<32x256xf32>
    %cst_43 = arith.constant 0.00999999977 : f32
    %57 = vector.broadcast %cst_43 : f32 to vector<32x256xf32>
    %58 = arith.mulf %57, %54 : vector<32x256xf32>
    %59 = arith.select %56, %54, %58 : vector<32x256xi1>, vector<32x256xf32>
    %c4_44 = arith.constant 4 : index
    %c0_45 = arith.constant 0 : index
    %c0_46 = arith.constant 0 : index
    %60 = vector.load %arg5[%c4_44, %c0_45, %c0_46] : memref<9x1x32xf32, #tpu.memory_space<vmem>>, vector<1x1x32xf32>
    %61 = vector.shape_cast %60 : vector<1x1x32xf32> to vector<1x32xf32>
    %cst_47 = arith.constant dense<0.000000e+00> : vector<1x256xf32>
    %62 = tpu.matmul %61, %59, %cst_47 {dimension_numbers = #tpu.dot_dimension_numbers<[1], [0], [0], [1], [0, 0, 1, 1], [], []>} : vector<1x32xf32>, vector<32x256xf32>, vector<1x256xf32> -> vector<1x256xf32>
    %63 = arith.addf %51, %62 : vector<1x256xf32>
    %c5 = arith.constant 5 : index
    %c0_48 = arith.constant 0 : index
    %c0_49 = arith.constant 0 : index
    %64 = vector.load %arg4[%c5, %c0_48, %c0_49] : memref<9x32x26xf32, #tpu.memory_space<vmem>>, vector<1x32x26xf32>
    %65 = vector.shape_cast %64 : vector<1x32x26xf32> to vector<32x26xf32>
    %cst_50 = arith.constant dense<0.000000e+00> : vector<32x256xf32>
    %66 = tpu.matmul %65, %2, %cst_50 {dimension_numbers = #tpu.dot_dimension_numbers<[1], [0], [0], [1], [0, 0, 1, 1], [], []>} : vector<32x26xf32>, vector<26x256xf32>, vector<32x256xf32> -> vector<32x256xf32>
    %cst_51 = arith.constant 0.000000e+00 : f32
    %67 = vector.broadcast %cst_51 : f32 to vector<32x256xf32>
    %68 = arith.cmpf ogt, %66, %67 : vector<32x256xf32>
    %cst_52 = arith.constant 0.00999999977 : f32
    %69 = vector.broadcast %cst_52 : f32 to vector<32x256xf32>
    %70 = arith.mulf %69, %66 : vector<32x256xf32>
    %71 = arith.select %68, %66, %70 : vector<32x256xi1>, vector<32x256xf32>
    %c5_53 = arith.constant 5 : index
    %c0_54 = arith.constant 0 : index
    %c0_55 = arith.constant 0 : index
    %72 = vector.load %arg5[%c5_53, %c0_54, %c0_55] : memref<9x1x32xf32, #tpu.memory_space<vmem>>, vector<1x1x32xf32>
    %73 = vector.shape_cast %72 : vector<1x1x32xf32> to vector<1x32xf32>
    %cst_56 = arith.constant dense<0.000000e+00> : vector<1x256xf32>
    %74 = tpu.matmul %73, %71, %cst_56 {dimension_numbers = #tpu.dot_dimension_numbers<[1], [0], [0], [1], [0, 0, 1, 1], [], []>} : vector<1x32xf32>, vector<32x256xf32>, vector<1x256xf32> -> vector<1x256xf32>
    %75 = arith.addf %63, %74 : vector<1x256xf32>
    %c6 = arith.constant 6 : index
    %c0_57 = arith.constant 0 : index
    %c0_58 = arith.constant 0 : index
    %76 = vector.load %arg4[%c6, %c0_57, %c0_58] : memref<9x32x26xf32, #tpu.memory_space<vmem>>, vector<1x32x26xf32>
    %77 = vector.shape_cast %76 : vector<1x32x26xf32> to vector<32x26xf32>
    %cst_59 = arith.constant dense<0.000000e+00> : vector<32x256xf32>
    %78 = tpu.matmul %77, %2, %cst_59 {dimension_numbers = #tpu.dot_dimension_numbers<[1], [0], [0], [1], [0, 0, 1, 1], [], []>} : vector<32x26xf32>, vector<26x256xf32>, vector<32x256xf32> -> vector<32x256xf32>
    %cst_60 = arith.constant 0.000000e+00 : f32
    %79 = vector.broadcast %cst_60 : f32 to vector<32x256xf32>
    %80 = arith.cmpf ogt, %78, %79 : vector<32x256xf32>
    %cst_61 = arith.constant 0.00999999977 : f32
    %81 = vector.broadcast %cst_61 : f32 to vector<32x256xf32>
    %82 = arith.mulf %81, %78 : vector<32x256xf32>
    %83 = arith.select %80, %78, %82 : vector<32x256xi1>, vector<32x256xf32>
    %c6_62 = arith.constant 6 : index
    %c0_63 = arith.constant 0 : index
    %c0_64 = arith.constant 0 : index
    %84 = vector.load %arg5[%c6_62, %c0_63, %c0_64] : memref<9x1x32xf32, #tpu.memory_space<vmem>>, vector<1x1x32xf32>
    %85 = vector.shape_cast %84 : vector<1x1x32xf32> to vector<1x32xf32>
    %cst_65 = arith.constant dense<0.000000e+00> : vector<1x256xf32>
    %86 = tpu.matmul %85, %83, %cst_65 {dimension_numbers = #tpu.dot_dimension_numbers<[1], [0], [0], [1], [0, 0, 1, 1], [], []>} : vector<1x32xf32>, vector<32x256xf32>, vector<1x256xf32> -> vector<1x256xf32>
    %87 = arith.addf %75, %86 : vector<1x256xf32>
    %c7 = arith.constant 7 : index
    %c0_66 = arith.constant 0 : index
    %c0_67 = arith.constant 0 : index
    %88 = vector.load %arg4[%c7, %c0_66, %c0_67] : memref<9x32x26xf32, #tpu.memory_space<vmem>>, vector<1x32x26xf32>
    %89 = vector.shape_cast %88 : vector<1x32x26xf32> to vector<32x26xf32>
    %cst_68 = arith.constant dense<0.000000e+00> : vector<32x256xf32>
    %90 = tpu.matmul %89, %2, %cst_68 {dimension_numbers = #tpu.dot_dimension_numbers<[1], [0], [0], [1], [0, 0, 1, 1], [], []>} : vector<32x26xf32>, vector<26x256xf32>, vector<32x256xf32> -> vector<32x256xf32>
    %cst_69 = arith.constant 0.000000e+00 : f32
    %91 = vector.broadcast %cst_69 : f32 to vector<32x256xf32>
    %92 = arith.cmpf ogt, %90, %91 : vector<32x256xf32>
    %cst_70 = arith.constant 0.00999999977 : f32
    %93 = vector.broadcast %cst_70 : f32 to vector<32x256xf32>
    %94 = arith.mulf %93, %90 : vector<32x256xf32>
    %95 = arith.select %92, %90, %94 : vector<32x256xi1>, vector<32x256xf32>
    %c7_71 = arith.constant 7 : index
    %c0_72 = arith.constant 0 : index
    %c0_73 = arith.constant 0 : index
    %96 = vector.load %arg5[%c7_71, %c0_72, %c0_73] : memref<9x1x32xf32, #tpu.memory_space<vmem>>, vector<1x1x32xf32>
    %97 = vector.shape_cast %96 : vector<1x1x32xf32> to vector<1x32xf32>
    %cst_74 = arith.constant dense<0.000000e+00> : vector<1x256xf32>
    %98 = tpu.matmul %97, %95, %cst_74 {dimension_numbers = #tpu.dot_dimension_numbers<[1], [0], [0], [1], [0, 0, 1, 1], [], []>} : vector<1x32xf32>, vector<32x256xf32>, vector<1x256xf32> -> vector<1x256xf32>
    %99 = arith.addf %87, %98 : vector<1x256xf32>
    %c8 = arith.constant 8 : index
    %c0_75 = arith.constant 0 : index
    %c0_76 = arith.constant 0 : index
    %100 = vector.load %arg4[%c8, %c0_75, %c0_76] : memref<9x32x26xf32, #tpu.memory_space<vmem>>, vector<1x32x26xf32>
    %101 = vector.shape_cast %100 : vector<1x32x26xf32> to vector<32x26xf32>
    %cst_77 = arith.constant dense<0.000000e+00> : vector<32x256xf32>
    %102 = tpu.matmul %101, %2, %cst_77 {dimension_numbers = #tpu.dot_dimension_numbers<[1], [0], [0], [1], [0, 0, 1, 1], [], []>} : vector<32x26xf32>, vector<26x256xf32>, vector<32x256xf32> -> vector<32x256xf32>
    %cst_78 = arith.constant 0.000000e+00 : f32
    %103 = vector.broadcast %cst_78 : f32 to vector<32x256xf32>
    %104 = arith.cmpf ogt, %102, %103 : vector<32x256xf32>
    %cst_79 = arith.constant 0.00999999977 : f32
    %105 = vector.broadcast %cst_79 : f32 to vector<32x256xf32>
    %106 = arith.mulf %105, %102 : vector<32x256xf32>
    %107 = arith.select %104, %102, %106 : vector<32x256xi1>, vector<32x256xf32>
    %c8_80 = arith.constant 8 : index
    %c0_81 = arith.constant 0 : index
    %c0_82 = arith.constant 0 : index
    %108 = vector.load %arg5[%c8_80, %c0_81, %c0_82] : memref<9x1x32xf32, #tpu.memory_space<vmem>>, vector<1x1x32xf32>
    %109 = vector.shape_cast %108 : vector<1x1x32xf32> to vector<1x32xf32>
    %cst_83 = arith.constant dense<0.000000e+00> : vector<1x256xf32>
    %110 = tpu.matmul %109, %107, %cst_83 {dimension_numbers = #tpu.dot_dimension_numbers<[1], [0], [0], [1], [0, 0, 1, 1], [], []>} : vector<1x32xf32>, vector<32x256xf32>, vector<1x256xf32> -> vector<1x256xf32>
    %111 = arith.addf %99, %110 : vector<1x256xf32>
    %c0_84 = arith.constant 0 : index
    %112 = memref.load %arg2[%c0_84] : memref<1xf32, #tpu.memory_space<smem>>
    %113 = vector.broadcast %112 : f32 to vector<1x256xf32>
    %114 = arith.addf %111, %113 : vector<1x256xf32>
    %c0_85 = arith.constant 0 : index
    %c0_86 = arith.constant 0 : index
    %c0_87 = arith.constant 0 : index
    %115 = vector.load %arg6[%c0_85, %c0_86, %c0_87] : memref<1x1x256xf32, #tpu.memory_space<vmem>>, vector<1x1x256xf32>
    %116 = vector.shape_cast %115 : vector<1x1x256xf32> to vector<1x256xf32>
    %117 = vector.shape_cast %114 : vector<1x256xf32> to vector<1x1x256xf32>
    tpu.vector_store %arg6[%c0_85, %c0_86, %c0_87], %117 {strides = array<i32>} : memref<1x1x256xf32, #tpu.memory_space<vmem>>, vector<1x1x256xf32>,
    return
  }
  func.func @transform_0(%arg0: i32, %arg1: i32) -> i32 {
    %c0_i32 = arith.constant 0 : i32
    %c0_i32_0 = arith.constant 0 : i32
    return %c0_i32 : i32
  }
  func.func @transform_1(%arg0: i32, %arg1: i32) -> (i32, i32, i32) {
    %c0_i32 = arith.constant 0 : i32
    %c0_i32_0 = arith.constant 0 : i32
    return %arg0, %c0_i32, %arg1 : i32, i32, i32
  }
  func.func @transform_2(%arg0: i32, %arg1: i32) -> (i32, i32, i32) {
    %c0_i32 = arith.constant 0 : i32
    %c0_i32_0 = arith.constant 0 : i32
    %c0_i32_1 = arith.constant 0 : i32
    %c0_i32_2 = arith.constant 0 : i32
    return %c0_i32, %c0_i32_0, %c0_i32_1 : i32, i32, i32
  }
  func.func @transform_3(%arg0: i32, %arg1: i32) -> (i32, i32, i32) {
    %c0_i32 = arith.constant 0 : i32
    %c0_i32_0 = arith.constant 0 : i32
    %c0_i32_1 = arith.constant 0 : i32
    %c0_i32_2 = arith.constant 0 : i32
    return %c0_i32, %c0_i32_0, %c0_i32_1 : i32, i32, i32
  }
  func.func @transform_4(%arg0: i32, %arg1: i32) -> (i32, i32, i32) {
    %c0_i32 = arith.constant 0 : i32
    %c0_i32_0 = arith.constant 0 : i32
    return %arg0, %c0_i32, %arg1 : i32, i32, i32
  }
}

module attributes {stable_mosaic.version = 11 : i64} {
  func.func @_fuse_kernel(%arg0: i32, %arg1: i32, %arg2: memref<6xf32, #tpu.memory_space<smem>>, %arg3: memref<1x9x256xbf16, #tpu.memory_space<vmem>>, %arg4: memref<1x1x256xf32, #tpu.memory_space<vmem>>, %arg5: memref<1x32x256xbf16, #tpu.memory_space<vmem>>, %arg6: memref<64x9xf32, #tpu.memory_space<vmem>>, %arg7: memref<64x1xf32, #tpu.memory_space<vmem>>, %arg8: memref<32x1xf32, #tpu.memory_space<vmem>>, %arg9: memref<32x1xf32, #tpu.memory_space<vmem>>, %arg10: memref<1x32x256xf32, #tpu.memory_space<vmem>>) attributes {dimension_semantics = [#tpu.dimension_semantics<parallel>, #tpu.dimension_semantics<parallel>], iteration_bounds = array<i64: 2, 1>, scalar_prefetch = 0 : i64, scratch_operands = 0 : i64, tpu.core_type = #tpu.core_type<tc>, window_params = [{transform_indices = @transform_0, window_bounds = array<i64: 6>}, {transform_indices = @transform_1, window_bounds = array<i64: 1, 9, 256>}, {transform_indices = @transform_2, window_bounds = array<i64: 1, 1, 256>}, {transform_indices = @transform_3, window_bounds = array<i64: 1, 32, 256>}, {pipeline_mode = #tpu.pipeline_mode<synchronous>, transform_indices = @transform_4, window_bounds = array<i64: 64, 9>}, {pipeline_mode = #tpu.pipeline_mode<synchronous>, transform_indices = @transform_5, window_bounds = array<i64: 64, 1>}, {pipeline_mode = #tpu.pipeline_mode<synchronous>, transform_indices = @transform_6, window_bounds = array<i64: 32, 1>}, {pipeline_mode = #tpu.pipeline_mode<synchronous>, transform_indices = @transform_7, window_bounds = array<i64: 32, 1>}, {transform_indices = @transform_8, window_bounds = array<i64: 1, 32, 256>}]} {
    %c0 = arith.constant 0 : index
    %0 = memref.load %arg2[%c0] : memref<6xf32, #tpu.memory_space<smem>>
    %c1 = arith.constant 1 : index
    %1 = memref.load %arg2[%c1] : memref<6xf32, #tpu.memory_space<smem>>
    %c2 = arith.constant 2 : index
    %2 = memref.load %arg2[%c2] : memref<6xf32, #tpu.memory_space<smem>>
    %c3 = arith.constant 3 : index
    %3 = memref.load %arg2[%c3] : memref<6xf32, #tpu.memory_space<smem>>
    %c4 = arith.constant 4 : index
    %4 = memref.load %arg2[%c4] : memref<6xf32, #tpu.memory_space<smem>>
    %c5 = arith.constant 5 : index
    %5 = memref.load %arg2[%c5] : memref<6xf32, #tpu.memory_space<smem>>
    %c0_0 = arith.constant 0 : index
    %c0_1 = arith.constant 0 : index
    %c0_2 = arith.constant 0 : index
    %6 = vector.load %arg3[%c0_0, %c0_1, %c0_2] : memref<1x9x256xbf16, #tpu.memory_space<vmem>>, vector<1x9x256xbf16>
    %7 = vector.shape_cast %6 : vector<1x9x256xbf16> to vector<9x256xbf16>
    %8 = arith.extf %7 : vector<9x256xbf16> to vector<9x256xf32>
    %c0_3 = arith.constant 0 : index
    %c0_4 = arith.constant 0 : index
    %9 = vector.load %arg6[%c0_3, %c0_4] : memref<64x9xf32, #tpu.memory_space<vmem>>, vector<64x9xf32>
    %cst = arith.constant dense<0.000000e+00> : vector<64x256xf32>
    %10 = tpu.matmul %9, %8, %cst {dimension_numbers = #tpu.dot_dimension_numbers<[1], [0], [0], [1], [0, 0, 1, 1], [], []>} : vector<64x9xf32>, vector<9x256xf32>, vector<64x256xf32> -> vector<64x256xf32>
    %c0_5 = arith.constant 0 : index
    %c0_6 = arith.constant 0 : index
    %11 = vector.load %arg7[%c0_5, %c0_6] : memref<64x1xf32, #tpu.memory_space<vmem>>, vector<64x1xf32>
    %12 = vector.broadcast %11 : vector<64x1xf32> to vector<64x256xf32>
    %13 = arith.addf %10, %12 : vector<64x256xf32>
    %cst_7 = arith.constant 0.000000e+00 : f32
    %14 = vector.broadcast %cst_7 : f32 to vector<64x256xf32>
    %15 = arith.cmpf ogt, %13, %14 : vector<64x256xf32>
    %cst_8 = arith.constant 0.00999999977 : f32
    %16 = vector.broadcast %cst_8 : f32 to vector<64x256xf32>
    %17 = arith.mulf %16, %13 : vector<64x256xf32>
    %18 = arith.select %15, %13, %17 : vector<64x256xi1>, vector<64x256xf32>
    %19 = vector.extract_strided_slice %18 {offsets = [0, 0], sizes = [32, 256], strides = [1, 1]} : vector<64x256xf32> to vector<32x256xf32>
    %20 = vector.extract_strided_slice %18 {offsets = [32, 0], sizes = [32, 256], strides = [1, 1]} : vector<64x256xf32> to vector<32x256xf32>
    %c0_9 = arith.constant 0 : index
    %c0_10 = arith.constant 0 : index
    %c0_11 = arith.constant 0 : index
    %21 = vector.load %arg5[%c0_9, %c0_10, %c0_11] : memref<1x32x256xbf16, #tpu.memory_space<vmem>>, vector<1x32x256xbf16>
    %22 = vector.shape_cast %21 : vector<1x32x256xbf16> to vector<32x256xbf16>
    %23 = arith.extf %22 : vector<32x256xbf16> to vector<32x256xf32>
    %c0_12 = arith.constant 0 : index
    %c0_13 = arith.constant 0 : index
    %24 = vector.load %arg8[%c0_12, %c0_13] : memref<32x1xf32, #tpu.memory_space<vmem>>, vector<32x1xf32>
    %25 = vector.broadcast %24 : vector<32x1xf32> to vector<32x256xf32>
    %26 = arith.mulf %23, %25 : vector<32x256xf32>
    %c0_14 = arith.constant 0 : index
    %c0_15 = arith.constant 0 : index
    %27 = vector.load %arg9[%c0_14, %c0_15] : memref<32x1xf32, #tpu.memory_space<vmem>>, vector<32x1xf32>
    %28 = vector.broadcast %27 : vector<32x1xf32> to vector<32x256xf32>
    %29 = arith.addf %26, %28 : vector<32x256xf32>
    %cst_16 = arith.constant 0.000000e+00 : f32
    %30 = vector.broadcast %cst_16 : f32 to vector<32x256xf32>
    %31 = arith.cmpf ogt, %29, %30 : vector<32x256xf32>
    %cst_17 = arith.constant 0.00999999977 : f32
    %32 = vector.broadcast %cst_17 : f32 to vector<32x256xf32>
    %33 = arith.mulf %32, %29 : vector<32x256xf32>
    %34 = arith.select %31, %29, %33 : vector<32x256xi1>, vector<32x256xf32>
    %c0_18 = arith.constant 0 : index
    %c0_19 = arith.constant 0 : index
    %c0_20 = arith.constant 0 : index
    %35 = vector.load %arg4[%c0_18, %c0_19, %c0_20] : memref<1x1x256xf32, #tpu.memory_space<vmem>>, vector<1x1x256xf32>
    %36 = vector.shape_cast %35 : vector<1x1x256xf32> to vector<1x256xf32>
    %37 = vector.broadcast %4 : f32 to vector<1x256xf32>
    %38 = arith.mulf %36, %37 : vector<1x256xf32>
    %39 = vector.broadcast %5 : f32 to vector<1x256xf32>
    %40 = arith.addf %38, %39 : vector<1x256xf32>
    %cst_21 = arith.constant dense<0.000000e+00> : vector<256xf32>
    %41 = vector.multi_reduction <add>, %34, %cst_21 [0] : vector<32x256xf32> to vector<256xf32>
    %42 = vector.shape_cast %41 : vector<256xf32> to vector<1x256xf32>
    %cst_22 = arith.constant 3.200000e+01 : f32
    %43 = vector.broadcast %cst_22 : f32 to vector<1x256xf32>
    %44 = arith.divf %42, %43 : vector<1x256xf32>
    %45 = vector.broadcast %44 : vector<1x256xf32> to vector<32x256xf32>
    %46 = arith.subf %34, %45 : vector<32x256xf32>
    %47 = arith.mulf %46, %46 : vector<32x256xf32>
    %cst_23 = arith.constant dense<0.000000e+00> : vector<256xf32>
    %48 = vector.multi_reduction <add>, %47, %cst_23 [0] : vector<32x256xf32> to vector<256xf32>
    %49 = vector.shape_cast %48 : vector<256xf32> to vector<1x256xf32>
    %cst_24 = arith.constant 3.100000e+01 : f32
    %50 = vector.broadcast %cst_24 : f32 to vector<1x256xf32>
    %51 = arith.divf %49, %50 : vector<1x256xf32>
    %52 = math.sqrt %51 : vector<1x256xf32>
    %53 = vector.broadcast %0 : f32 to vector<1x256xf32>
    %54 = arith.mulf %53, %52 : vector<1x256xf32>
    %55 = arith.subf %40, %54 : vector<1x256xf32>
    %56 = vector.broadcast %2 : f32 to vector<1x256xf32>
    %57 = arith.subf %55, %56 : vector<1x256xf32>
    %cst_25 = arith.constant 0.000000e+00 : f32
    %58 = vector.broadcast %cst_25 : f32 to vector<1x256xf32>
    %59 = arith.maximumf %57, %58 : vector<1x256xf32>
    %60 = arith.negf %59 : vector<1x256xf32>
    %61 = math.exp %60 : vector<1x256xf32>
    %cst_26 = arith.constant 1.000000e+00 : f32
    %62 = vector.broadcast %cst_26 : f32 to vector<1x256xf32>
    %63 = arith.addf %62, %61 : vector<1x256xf32>
    %64 = arith.divf %62, %63 : vector<1x256xf32>
    %65 = vector.broadcast %1 : f32 to vector<1x256xf32>
    %66 = arith.mulf %65, %52 : vector<1x256xf32>
    %67 = vector.broadcast %3 : f32 to vector<1x256xf32>
    %68 = arith.addf %66, %67 : vector<1x256xf32>
    %69 = arith.subf %68, %40 : vector<1x256xf32>
    %cst_27 = arith.constant 0.000000e+00 : f32
    %70 = vector.broadcast %cst_27 : f32 to vector<1x256xf32>
    %71 = arith.maximumf %69, %70 : vector<1x256xf32>
    %72 = arith.negf %71 : vector<1x256xf32>
    %73 = math.exp %72 : vector<1x256xf32>
    %cst_28 = arith.constant 1.000000e+00 : f32
    %74 = vector.broadcast %cst_28 : f32 to vector<1x256xf32>
    %75 = arith.addf %74, %73 : vector<1x256xf32>
    %76 = arith.divf %74, %75 : vector<1x256xf32>
    %77 = arith.addf %64, %76 : vector<1x256xf32>
    %78 = arith.mulf %19, %34 : vector<32x256xf32>
    %79 = arith.addf %78, %20 : vector<32x256xf32>
    %80 = vector.broadcast %77 : vector<1x256xf32> to vector<32x256xf32>
    %81 = arith.mulf %80, %79 : vector<32x256xf32>
    %82 = arith.addf %81, %34 : vector<32x256xf32>
    %c0_29 = arith.constant 0 : index
    %c0_30 = arith.constant 0 : index
    %c0_31 = arith.constant 0 : index
    %83 = vector.load %arg10[%c0_29, %c0_30, %c0_31] : memref<1x32x256xf32, #tpu.memory_space<vmem>>, vector<1x32x256xf32>
    %84 = vector.shape_cast %83 : vector<1x32x256xf32> to vector<32x256xf32>
    %85 = vector.shape_cast %82 : vector<32x256xf32> to vector<1x32x256xf32>
    tpu.vector_store %arg10[%c0_29, %c0_30, %c0_31], %85 {strides = array<i32>} : memref<1x32x256xf32, #tpu.memory_space<vmem>>, vector<1x32x256xf32>,
    return
  }
  func.func @transform_0(%arg0: i32, %arg1: i32) -> i32 {
    %c0_i32 = arith.constant 0 : i32
    %c0_i32_0 = arith.constant 0 : i32
    return %c0_i32 : i32
  }
  func.func @transform_1(%arg0: i32, %arg1: i32) -> (i32, i32, i32) {
    %c0_i32 = arith.constant 0 : i32
    %c0_i32_0 = arith.constant 0 : i32
    return %arg0, %c0_i32, %arg1 : i32, i32, i32
  }
  func.func @transform_2(%arg0: i32, %arg1: i32) -> (i32, i32, i32) {
    %c0_i32 = arith.constant 0 : i32
    %c0_i32_0 = arith.constant 0 : i32
    return %arg0, %c0_i32, %arg1 : i32, i32, i32
  }
  func.func @transform_3(%arg0: i32, %arg1: i32) -> (i32, i32, i32) {
    %c0_i32 = arith.constant 0 : i32
    %c0_i32_0 = arith.constant 0 : i32
    return %arg0, %c0_i32, %arg1 : i32, i32, i32
  }
  func.func @transform_4(%arg0: i32, %arg1: i32) -> (i32, i32) {
    %c0_i32 = arith.constant 0 : i32
    %c0_i32_0 = arith.constant 0 : i32
    %c0_i32_1 = arith.constant 0 : i32
    return %c0_i32, %c0_i32_0 : i32, i32
  }
  func.func @transform_5(%arg0: i32, %arg1: i32) -> (i32, i32) {
    %c0_i32 = arith.constant 0 : i32
    %c0_i32_0 = arith.constant 0 : i32
    %c0_i32_1 = arith.constant 0 : i32
    return %c0_i32, %c0_i32_0 : i32, i32
  }
  func.func @transform_6(%arg0: i32, %arg1: i32) -> (i32, i32) {
    %c0_i32 = arith.constant 0 : i32
    %c0_i32_0 = arith.constant 0 : i32
    %c0_i32_1 = arith.constant 0 : i32
    return %c0_i32, %c0_i32_0 : i32, i32
  }
  func.func @transform_7(%arg0: i32, %arg1: i32) -> (i32, i32) {
    %c0_i32 = arith.constant 0 : i32
    %c0_i32_0 = arith.constant 0 : i32
    %c0_i32_1 = arith.constant 0 : i32
    return %c0_i32, %c0_i32_0 : i32, i32
  }
  func.func @transform_8(%arg0: i32, %arg1: i32) -> (i32, i32, i32) {
    %c0_i32 = arith.constant 0 : i32
    %c0_i32_0 = arith.constant 0 : i32
    return %arg0, %c0_i32, %arg1 : i32, i32, i32
  }
}

</mosaic_0001>

<bundles_post_ra>
// kernel: res_dense_net_forward.3
= control target key start
LH: loop header
LB: loop body
LE: loop exit
PB: predicated region body
PF: predicated region fallthrough
CT: control target
= control target key end

     0   :  { %s582_s12 = smov 0   ;;  %s584_s13 = smov 0   ;;  %s679_s0 = inlined_call_operand.vmem [shape: bf16[2,26,256], index: 0, kind: input, shape index: {}]   ;;  %s680_s1 = inlined_call_operand.vmem [shape: f32[32,26], index: 1, kind: input, shape index: {}]   ;;  %s681_s2 = inlined_call_operand.vmem [shape: f32[2,32,1], index: 2, kind: output, shape index: {0}]   ;;  %s682_s3 = inlined_call_operand.vmem [shape: f32[2,32,1], index: 3, kind: output, shape index: {1}]  }
   0x1   :  { %s586_s14 = smov 0  }
   0x2 LB: > { %s26_s15 = sadd.s32 1, %s555_s13  ;;  %p482_p0 = scmp.ge.s32.totalorder %s559_s14, 1  ;;  %s559_s14 = sphi %s586_s14, %s14_s14   ;;  %s555_s13 = sphi %s584_s13, %s684_s13   ;;  %s551_s12 = sphi %s582_s12, %s683_s12  }
   0x3   : > { %p28_p1 = scmp.ge.s32.totalorder %s26_s15, 2  ;;  %p159_p2 = scmp.lt.s32.totalorder %s559_s14, 3 }
   0x5   : > { %s686_s15 = smov (%p28_p1, %s26_s15), 0  ;;  %p160_p3 = pnand %p482_p0, %p159_p2 }
   0x6   : > { %p193_p4 = scmp.lt.s32.totalorder (!%p160_p3), %s551_s12, 1 }
   0x7   : > { %163 = sbr.rel (%p160_p3) target bundleno = 296 (0x128), region = 28 }
   0xc   : > { %s688_s12 = smov (!%p193_p4, %s551_s12), 1  ;;  %vm254_vm0 = vcmask 1041408   ;;  %v237_v12 = vld [vmem:[%s680_s1] sm:$0xff]  ;;  %vm241_vm1 = vcmask 211968   ;;  %v239_v13 = vld [vmem:[%s680_s1 + $0x10] sm:$0xff]  ;;  %v238_v14 = vld [vmem:[%s680_s1 + $0x8] sm:$0xff] }
   0xd   : > { %s600_s16 = sshll.u32 %s688_s12, 5  ;;  %v240_v15 = vld [vmem:[%s680_s1 + $0x18] sm:$0xff]  ;;  %vm216_vm2 = vcmask 7168   ;;  %v561_v16 = vmov 0.0  }
   0xe   : > { %s200_s19 = scalar_lea.vmem %s679_s0, %s600_s16  ;;  %s622_s30 = scalar_lea.vmem %s681_s2, %s600_s16 }
   0xf   : > { %v228_v0 = vld [vmem:[%s200_s19 + $0x18] sm:$0x11]  ;;  %v227_v1 = vld [vmem:[%s200_s19 + $0x10] sm:$0xff]  ;;  %v226_v2 = vld [vmem:[%s200_s19 + $0x8] sm:$0xff]  ;;  %217 = vst.msk [vmem:[%s622_s30] sm:$0xff] %vm216_vm2, %v561_v16  ;;  %s630_s6 = scalar_lea.vmem %s682_s3, %s600_s16 }
  0x10   : > { %v235_v3 = vunpack.c.l.bf16 %v228_v0  ;;  %v236_v4 = vunpack.c.h.bf16 %v228_v0  ;;  %v233_v5 = vunpack.c.l.bf16 %v227_v1  ;;  %v234_v6 = vunpack.c.h.bf16 %v227_v1  ;;  %v225_v7 = vld [vmem:[%s200_s19] sm:$0xff]  ;;  %218 = vst.msk [vmem:[%s622_s30 + $0x8] sm:$0xff] %vm216_vm2, %v561_v16 }
  0x11   : > { %v231_v8 = vunpack.c.l.bf16 %v226_v2  ;;  %v232_v9 = vunpack.c.h.bf16 %v226_v2  ;;  %v229_v10 = vunpack.c.l.bf16 %v225_v7  ;;  %v230_v11 = vunpack.c.h.bf16 %v225_v7  ;;  %219 = vst.msk [vmem:[%s622_s30 + $0x10] sm:$0xff] %vm216_vm2, %v561_v16 }
  0x12   : > { %489 = vmatpush.msk.msra.mxu0 %vm254_vm0, %v235_v3  ;;  %504 = vmatpush.msk.msra.mxu2 %vm254_vm0, %v235_v3  ;;  %220 = vst.msk [vmem:[%s622_s30 + $0x18] sm:$0xff] %vm216_vm2, %v561_v16 }
  0x13   : > { %494 = vmatpush.msk.msra.mxu1 %vm254_vm0, %v236_v4  ;;  %508 = vmatpush.msk.msra.mxu3 %vm254_vm0, %v236_v4  ;;  %221 = vst.msk [vmem:[%s630_s6] sm:$0xff] %vm216_vm2, %v561_v16 }
  0x14   : > { %274 = vmatpush.msra.mxu0 %v233_v5  ;;  %505 = vmatpush.msra.mxu2 %v233_v5  ;;  %222 = vst.msk [vmem:[%s630_s6 + $0x8] sm:$0xff] %vm216_vm2, %v561_v16 }
  0x15   : > { %303 = vmatpush.msra.mxu1 %v234_v6  ;;  %509 = vmatpush.msra.mxu3 %v234_v6  ;;  %223 = vst.msk [vmem:[%s630_s6 + $0x10] sm:$0xff] %vm216_vm2, %v561_v16 }
  0x16   : > { %275 = vmatpush.msra.mxu0 %v231_v8  ;;  %506 = vmatpush.msra.mxu2 %v231_v8  ;;  %224 = vst.msk [vmem:[%s630_s6 + $0x18] sm:$0xff] %vm216_vm2, %v561_v16  ;;  %v319_v41 = vld [vmem:[%s622_s30] sm:$0xff] }
  0x17   : > { %304 = vmatpush.msra.mxu1 %v232_v9  ;;  %510 = vmatpush.msra.mxu3 %v232_v9  ;;  %v320_v49 = vld [vmem:[%s622_s30 + $0x8] sm:$0xff] }
  0x18   : > { %276 = vmatpush.msra.mxu0 %v229_v10  ;;  %507 = vmatpush.msra.mxu2 %v229_v10  ;;  %v321_v47 = vld [vmem:[%s622_s30 + $0x10] sm:$0xff] }
  0x19   : > { %305 = vmatpush.msra.mxu1 %v230_v11  ;;  %511 = vmatpush.msra.mxu3 %v230_v11  ;;  %v322_v56 = vld [vmem:[%s622_s30 + $0x18] sm:$0xff] }
  0x1a   : > { %490 = vmatmul.msk.f32.vlgmr.msra.gmra.mxu0 %vm241_vm1, %v237_v12  ;;  %492 = vmatmul.msk.f32.vlgmr.msra.gmra.mxu2 %vm241_vm1, %v239_v13  ;;  %v344_v43 = vld [vmem:[%s630_s6] sm:$0xff] }
  0x1b   : > { %495 = vmatmul.msk.f32.vlgmr.msra.gmra.mxu1 %vm241_vm1, %v237_v12  ;;  %497 = vmatmul.msk.f32.vlgmr.msra.gmra.mxu3 %vm241_vm1, %v239_v13  ;;  %v345_v52 = vld [vmem:[%s630_s6 + $0x8] sm:$0xff] }
  0x1c   : > { %v346_v58 = vld [vmem:[%s630_s6 + $0x10] sm:$0xff] }
  0x1d   : > { %v347_v62 = vld [vmem:[%s630_s6 + $0x18] sm:$0xff] }
  0x22   : > { %491 = vmatmul.msk.f32.gmra.mxu0 %vm241_vm1, %v238_v14  ;;  %493 = vmatmul.msk.f32.gmra.mxu2 %vm241_vm1, %v240_v15 }
  0x23   : > { %496 = vmatmul.msk.f32.gmra.mxu1 %vm241_vm1, %v238_v14  ;;  %498 = vmatmul.msk.f32.gmra.mxu3 %vm241_vm1, %v240_v15 }
  0x97   : > { %v278_v17 = vpop.f32.mrf.mxu0 }
  0x98   : > { %v348_v18 = vmul.f32 %v278_v17, %v278_v17  ;;  %v307_v19 = vpop.f32.mrf.mxu1 }
  0x99   : > { %v349_v20 = vmul.f32 %v307_v19, %v307_v19  ;;  %v323_v21 = vadd.f32 %v307_v19, %v278_v17 }
  0x9b   : > { %324 = vadd.xlane.f32.xlu0 %v323_v21  ;;  %v356_v22 = vadd.f32 %v349_v20, %v348_v18 }
  0x9d   : > { %v284_v23 = vpop.f32.mrf.mxu2  ;;  %357 = vadd.xlane.f32.xlu2 %v356_v22 }
  0x9e   : > { %v313_v24 = vpop.f32.mrf.mxu3  ;;  %v352_v32 = vmul.f32 %v284_v23, %v284_v23 }
  0x9f   : > { %v281_v25 = vpop.f32.mrf.mxu0  ;;  %v329_v26 = vadd.f32 %v313_v24, %v284_v23  ;;  %v353_v33 = vmul.f32 %v313_v24, %v313_v24 }
  0xa0   : > { %v350_v27 = vmul.f32 %v281_v25, %v281_v25  ;;  %v310_v28 = vpop.f32.mrf.mxu1 }
  0xa1   : > { %v326_v29 = vadd.f32 %v310_v28, %v281_v25  ;;  %v351_v30 = vmul.f32 %v310_v28, %v310_v28  ;;  %330 = vadd.xlane.f32.xlu1 %v329_v26  ;;  %v362_v37 = vadd.f32 %v353_v33, %v352_v32 }
  0xa3   : > { %327 = vadd.xlane.f32.xlu0 %v326_v29  ;;  %v359_v31 = vadd.f32 %v351_v30, %v350_v27 }
  0xa5   : > { %v287_v34 = vpop.f32.mrf.mxu2  ;;  %360 = vadd.xlane.f32.xlu2 %v359_v31 }
  0xa6   : > { %v316_v35 = vpop.f32.mrf.mxu3  ;;  %v354_v38 = vmul.f32 %v287_v34, %v287_v34 }
  0xa7   : > { %v332_v36 = vadd.f32 %v316_v35, %v287_v34  ;;  %v355_v39 = vmul.f32 %v316_v35, %v316_v35 }
  0xa9   : > { %333 = vadd.xlane.f32.xlu1 %v332_v36  ;;  %v365_v40 = vadd.f32 %v355_v39, %v354_v38 }
  0xab   : > { %363 = vadd.xlane.f32.xlu0 %v362_v37 }
  0xb1   : > { %366 = vadd.xlane.f32.xlu1 %v365_v40 }
 0x10e   : > { %v325_v42 = vpop.xlane.xlu0 %324 }
 0x10f   : > { %v335_v44 = vadd.f32 %v325_v42, %v319_v41 }
 0x110   : > { %v358_v45 = vpop.xlane.xlu2 %357 }
 0x111   : > { %340 = vst.msk [vmem:[%s622_s30] sm:$0xff] %vm216_vm2, %v335_v44  ;;  %v368_v46 = vadd.f32 %v358_v45, %v344_v43 }
 0x113   : > { %372 = vst.msk [vmem:[%s630_s6] sm:$0xff] %vm216_vm2, %v368_v46 }
 0x114   : > { %v331_v48 = vpop.xlane.xlu1 %330 }
 0x115   : > { %v337_v50 = vadd.f32 %v331_v48, %v321_v47 }
 0x116   : > { %v328_v51 = vpop.xlane.xlu0 %327 }
 0x117   : > { %342 = vst.msk [vmem:[%s622_s30 + $0x10] sm:$0xff] %vm216_vm2, %v337_v50  ;;  %v336_v53 = vadd.f32 %v328_v51, %v320_v49 }
 0x118   : > { %v361_v54 = vpop.xlane.xlu2 %360 }
 0x119   : > { %341 = vst.msk [vmem:[%s622_s30 + $0x8] sm:$0xff] %vm216_vm2, %v336_v53  ;;  %v369_v55 = vadd.f32 %v361_v54, %v345_v52 }
 0x11b   : > { %373 = vst.msk [vmem:[%s630_s6 + $0x8] sm:$0xff] %vm216_vm2, %v369_v55 }
 0x11c   : > { %v334_v57 = vpop.xlane.xlu1 %333 }
 0x11d   : > { %v338_v59 = vadd.f32 %v334_v57, %v322_v56 }
 0x11e   : > { %v364_v60 = vpop.xlane.xlu0 %363 }
 0x11f   : > { %343 = vst.msk [vmem:[%s622_s30 + $0x18] sm:$0xff] %vm216_vm2, %v338_v59  ;;  %v370_v61 = vadd.f32 %v364_v60, %v346_v58 }
 0x121   : > { %374 = vst.msk [vmem:[%s630_s6 + $0x10] sm:$0xff] %vm216_vm2, %v370_v61 }
 0x124   : > { %v367_v63 = vpop.xlane.xlu1 %366 }
 0x125   : > { %v371_v0 = vadd.f32 %v367_v63, %v347_v62 }
 0x127   : > { %375 = vst.msk [vmem:[%s630_s6 + $0x18] sm:$0xff] %vm216_vm2, %v371_v0 }
 0x128 PF: > { %s14_s14 = sadd.s32 1, %s559_s14   ;;  %s683_s12 = smov %s555_s13 }
 0x129   : > { %p11_p5 = scmp.ge.s32.totalorder %s14_s14, 4   ;;  %s684_s13 = smov %s686_s15 }
 0x12b   :  { %13 = sbr.rel (!%p11_p5) target bundleno = 2 (0x2), region = 74 }

// kernel: res_dense_net_forward.4
= control target key start
LH: loop header
LB: loop body
LE: loop exit
PB: predicated region body
PF: predicated region fallthrough
CT: control target
= control target key end

     0   :  { %s1904_s17 = smov 0   ;;  %s1906_s18 = smov 0   ;;  %s2328_s0 = inlined_call_operand.<no memory space> [shape: f32[1], index: 0, kind: input, shape index: {}]   ;;  %s2329_s1 = inlined_call_operand.vmem [shape: bf16[2,26,256], index: 1, kind: input, shape index: {}]   ;;  %s2330_s2 = inlined_call_operand.vmem [shape: f32[9,32,26], index: 2, kind: input, shape index: {}]   ;;  %s2331_s3 = inlined_call_operand.vmem [shape: f32[9,1,32], index: 3, kind: input, shape index: {}]   ;;  %s2332_s4 = inlined_call_operand.vmem [shape: f32[2,1,256], index: 4, kind: output, shape index: {}]  }
   0x1   :  { %9 = sst [smem:[#allocation2]] %s2328_s0  ;;  %s1908_s19 = smov 0  }
   0x2 LB: > { %s27_s0 = sadd.s32 1, %s1870_s18  ;;  %p1665_p0 = scmp.ge.s32.totalorder %s1874_s19, 1  ;;  %s1874_s19 = sphi %s1908_s19, %s15_s19   ;;  %s1870_s18 = sphi %s1906_s18, %s2334_s18   ;;  %s1866_s17 = sphi %s1904_s17, %s2333_s17  }
   0x3   : > { %p29_p1 = scmp.ge.s32.totalorder %s27_s0, 2  ;;  %p184_p2 = scmp.lt.s32.totalorder %s1874_s19, 3 }
   0x5   : > { %s2336_s0 = smov (%p29_p1, %s27_s0), 0  ;;  %p185_p3 = pnand %p1665_p0, %p184_p2 }
   0x6   : > { %p218_p4 = scmp.lt.s32.totalorder (!%p185_p3), %s1866_s17, 1  ;;  %s1565_s22 = sld [smem:[#allocation2]] (!%p185_p3) }
   0x7   : > { %188 = sbr.rel (%p185_p3) target bundleno = 1533 (0x5fd), region = 36 }
   0xc   : > { %s2338_s17 = smov (!%p218_p4, %s1866_s17), 1  ;;  %vm265_vm0 = vcmask 1041408   ;;  %v251_v12 = vld [vmem:[%s2330_s2 + $0x18] sm:$0xff]  ;;  %vm252_vm1 = vcmask 211968   ;;  %v248_v13 = vld [vmem:[%s2330_s2] sm:$0xff]  ;;  %v249_v15 = vld [vmem:[%s2330_s2 + $0x8] sm:$0xff] }
   0xd   : > { %s1819_s20 = sshll.u32 %s2338_s17, 5  ;;  %v1679_v14 = vld [vmem:[%s2330_s2 + $0x20] sm:$0xff]  ;;  %v1680_v16 = vld [vmem:[%s2330_s2 + $0x28] sm:$0xff]  ;;  %v250_v17 = vld [vmem:[%s2330_s2 + $0x10] sm:$0xff]  ;;  %vm456_vm10 = vcmask 261120  }
   0xe   : > { %s225_s23 = scalar_lea.vmem %s2329_s1, %s1819_s20  ;;  %v1681_v18 = vld [vmem:[%s2330_s2 + $0x30] sm:$0xff]  ;;  %v1682_v19 = vld [vmem:[%s2330_s2 + $0x38] sm:$0xff]  ;;  %v354_v48 = vld [vmem:[%s2331_s3] sm:$0x1] }
   0xf   : > { %v239_v0 = vld [vmem:[%s225_s23 + $0x18] sm:$0x11]  ;;  %v238_v1 = vld [vmem:[%s225_s23 + $0x10] sm:$0xff]  ;;  %v237_v2 = vld [vmem:[%s225_s23 + $0x8] sm:$0xff] }
  0x10   : > { %v1928_v3 = vunpack.c.l.bf16 %v239_v0  ;;  %v1930_v4 = vunpack.c.h.bf16 %v239_v0  ;;  %v1932_v5 = vunpack.c.l.bf16 %v238_v1  ;;  %v1934_v6 = vunpack.c.h.bf16 %v238_v1  ;;  %v236_v7 = vld [vmem:[%s225_s23] sm:$0xff]  ;;  %s1668_s23 = sshll.u32 %s2338_s17, 1 }
  0x11   : > { %v1940_v8 = vunpack.c.l.bf16 %v237_v2  ;;  %v1942_v9 = vunpack.c.h.bf16 %v237_v2  ;;  %v1950_v10 = vunpack.c.l.bf16 %v236_v7  ;;  %v1952_v11 = vunpack.c.h.bf16 %v236_v7  ;;  %v1693_v7 = vld [vmem:[%s2331_s3 + $0x1] sm:$0x1]  ;;  %s234_s26 = scalar_lea.vmem %s2332_s4, %s1668_s23 }
  0x12   : > { %1820 = vmatpush.msk.msra.mxu2 %vm265_vm0, %v1928_v3  ;;  %1824 = vmatpush.msk.msra.mxu3 %vm265_vm0, %v1930_v4 }
  0x13   : > { %1674 = vmatpush.msk.msra.mxu1 %vm265_vm0, %v1930_v4  ;;  %1669 = vmatpush.msk.msra.mxu0 %vm265_vm0, %v1928_v3 }
  0x14   : > { %1821 = vmatpush.msra.mxu2 %v1932_v5  ;;  %1825 = vmatpush.msra.mxu3 %v1934_v6 }
  0x15   : > { %314 = vmatpush.msra.mxu1 %v1934_v6  ;;  %285 = vmatpush.msra.mxu0 %v1932_v5 }
  0x16   : > { %1822 = vmatpush.msra.mxu2 %v1940_v8  ;;  %1826 = vmatpush.msra.mxu3 %v1942_v9 }
  0x17   : > { %315 = vmatpush.msra.mxu1 %v1942_v9  ;;  %286 = vmatpush.msra.mxu0 %v1940_v8 }
  0x18   : > { %1823 = vmatpush.msra.mxu2 %v1950_v10  ;;  %1827 = vmatpush.msra.mxu3 %v1952_v11 }
  0x19   : > { %1673 = vmatmul.msk.f32.vlgmr.msra.gmra.mxu2 %vm252_vm1, %v251_v12  ;;  %1678 = vmatmul.msk.f32.vlgmr.msra.gmra.mxu3 %vm252_vm1, %v251_v12 }
  0x1a   : > { %1683 = vmatpush.msk.msrb.mxu2 %vm265_vm0, %v1928_v3  ;;  %1688 = vmatpush.msk.msrb.mxu3 %vm265_vm0, %v1930_v4 }
  0x1b   : > { %316 = vmatpush.msra.mxu1 %v1952_v11  ;;  %287 = vmatpush.msra.mxu0 %v1950_v10 }
  0x1c   : > { %385 = vmatpush.msrb.mxu2 %v1932_v5  ;;  %414 = vmatpush.msrb.mxu3 %v1934_v6 }
  0x1d   : > { %1675 = vmatmul.msk.f32.vlgmr.msra.gmra.mxu1 %vm252_vm1, %v248_v13  ;;  %1670 = vmatmul.msk.f32.vlgmr.msra.gmra.mxu0 %vm252_vm1, %v248_v13 }
  0x1e   : > { %386 = vmatpush.msrb.mxu2 %v1940_v8  ;;  %415 = vmatpush.msrb.mxu3 %v1942_v9 }
  0x20   : > { %387 = vmatpush.msrb.mxu2 %v1950_v10  ;;  %416 = vmatpush.msrb.mxu3 %v1952_v11 }
  0x21   : > { %1684 = vmatmul.msk.f32.vlgmr.msrb.gmra.mxu2 %vm252_vm1, %v1679_v14  ;;  %1689 = vmatmul.msk.f32.vlgmr.msrb.gmra.mxu3 %vm252_vm1, %v1679_v14  ;;  %v1698_v14 = vld [vmem:[%s2330_s2 + $0x40] sm:$0xff] }
  0x25   : > { %1676 = vmatmul.msk.f32.gmra.mxu1 %vm252_vm1, %v249_v15  ;;  %1671 = vmatmul.msk.f32.gmra.mxu0 %vm252_vm1, %v249_v15  ;;  %v1699_v15 = vld [vmem:[%s2330_s2 + $0x48] sm:$0xff] }
  0x29   : > { %1685 = vmatmul.msk.f32.gmra.mxu2 %vm252_vm1, %v1680_v16  ;;  %1690 = vmatmul.msk.f32.gmra.mxu3 %vm252_vm1, %v1680_v16  ;;  %v1700_v16 = vld [vmem:[%s2330_s2 + $0x50] sm:$0xff] }
  0x2d   : > { %1677 = vmatmul.msk.f32.gmra.mxu1 %vm252_vm1, %v250_v17  ;;  %1672 = vmatmul.msk.f32.gmra.mxu0 %vm252_vm1, %v250_v17  ;;  %v1701_v17 = vld [vmem:[%s2330_s2 + $0x58] sm:$0xff] }
  0x31   : > { %1686 = vmatmul.msk.f32.gmra.mxu2 %vm252_vm1, %v1681_v18  ;;  %1691 = vmatmul.msk.f32.gmra.mxu3 %vm252_vm1, %v1681_v18 }
  0x39   : > { %1687 = vmatmul.msk.f32.gmra.mxu2 %vm252_vm1, %v1682_v19  ;;  %1692 = vmatmul.msk.f32.gmra.mxu3 %vm252_vm1, %v1682_v19 }
  0x9a   : > { %v318_v20 = vpop.f32.mrf.mxu1  ;;  %v289_v21 = vpop.f32.mrf.mxu0 }
  0x9b   : > { %v339_v34 = vmul.f32 0.01, %v318_v20  ;;  %v338_v35 = vmul.f32 0.01, %v289_v21  ;;  %vm331_vm8 = vcmp.gt.f32.partialorder %v318_v20, 0.0  ;;  %vm330_vm9 = vcmp.gt.f32.partialorder %v289_v21, 0.0 }
  0x9c   : > { %v298_v22 = vpop.f32.mrf.mxu2  ;;  %v327_v23 = vpop.f32.mrf.mxu3 }
  0x9d   : > { %vm336_vm2 = vcmp.gt.f32.partialorder %v298_v22, 0.0  ;;  %v344_v24 = vmul.f32 0.01, %v298_v22  ;;  %vm337_vm3 = vcmp.gt.f32.partialorder %v327_v23, 0.0  ;;  %v345_v25 = vmul.f32 0.01, %v327_v23 }
  0x9e   : > { %v347_v46 = vsel %vm331_vm8, %v318_v20, %v339_v34  ;;  %v346_v47 = vsel %vm330_vm9, %v289_v21, %v338_v35 }
  0x9f   : > { %v352_v26 = vsel %vm336_vm2, %v298_v22, %v344_v24  ;;  %v353_v27 = vsel %vm337_vm3, %v327_v23, %v345_v25 }
  0xa0   : > { %515 = vmatpush.msra.mxu2 %v352_v26  ;;  %535 = vmatpush.msra.mxu3 %v353_v27 }
  0xa2   : > { %v321_v28 = vpop.f32.mrf.mxu1  ;;  %v292_v29 = vpop.f32.mrf.mxu0 }
  0xa3   : > { %v341_v32 = vmul.f32 0.01, %v321_v28  ;;  %v340_v33 = vmul.f32 0.01, %v292_v29  ;;  %vm333_vm4 = vcmp.gt.f32.partialorder %v321_v28, 0.0  ;;  %vm332_vm5 = vcmp.gt.f32.partialorder %v292_v29, 0.0 }
  0xa4   : > { %v2014_v30 = vpop.f32.mrf.mxu2  ;;  %v2016_v31 = vpop.f32.mrf.mxu3 }
  0xa5   : > { %v349_v44 = vsel %vm333_vm4, %v321_v28, %v341_v32  ;;  %v348_v45 = vsel %vm332_vm5, %v292_v29, %v340_v33  ;;  %v438_v61 = vmul.f32 0.01, %v2014_v30  ;;  %v439_v62 = vmul.f32 0.01, %v2016_v31 }
  0xa6   : > { %vm430_vm3 = vcmp.gt.f32.partialorder %v2014_v30, 0.0  ;;  %vm431_vm4 = vcmp.gt.f32.partialorder %v2016_v31, 0.0 }
  0xa7   : > { %v446_v12 = vsel %vm430_vm3, %v2014_v30, %v438_v61  ;;  %v447_v13 = vsel %vm431_vm4, %v2016_v31, %v439_v62 }
  0xaa   : > { %v324_v36 = vpop.f32.mrf.mxu1  ;;  %v295_v37 = vpop.f32.mrf.mxu0 }
  0xab   : > { %vm335_vm6 = vcmp.gt.f32.partialorder %v324_v36, 0.0  ;;  %v343_v38 = vmul.f32 0.01, %v324_v36  ;;  %vm334_vm7 = vcmp.gt.f32.partialorder %v295_v37, 0.0  ;;  %v342_v39 = vmul.f32 0.01, %v295_v37 }
  0xac   : > { %v392_v40 = vpop.f32.mrf.mxu2  ;;  %v421_v41 = vpop.f32.mrf.mxu3 }
  0xad   : > { %v351_v42 = vsel %vm335_vm6, %v324_v36, %v343_v38  ;;  %v350_v43 = vsel %vm334_vm7, %v295_v37, %v342_v39  ;;  %v440_v57 = vmul.f32 0.01, %v392_v40  ;;  %v441_v58 = vmul.f32 0.01, %v421_v41 }
  0xae   : > { %536 = vmatpush.msra.mxu3 %v351_v42  ;;  %516 = vmatpush.msra.mxu2 %v350_v43  ;;  %vm432_vm15 = vcmp.gt.f32.partialorder %v392_v40, 0.0  ;;  %vm433_vm2 = vcmp.gt.f32.partialorder %v421_v41, 0.0  ;;  %v1712_v42 = vld [vmem:[%s2331_s3 + $0x2] sm:$0x1] }
  0xaf   : > { %v448_v1 = vsel %vm432_vm15, %v392_v40, %v440_v57  ;;  %v449_v2 = vsel %vm433_vm2, %v421_v41, %v441_v58 }
  0xb0   : > { %537 = vmatpush.msra.mxu3 %v349_v44  ;;  %517 = vmatpush.msra.mxu2 %v348_v45  ;;  %v1715_v45 = vld [vmem:[%s2330_s2 + $0x60] sm:$0xff] }
  0xb2   : > { %538 = vmatpush.msra.mxu3 %v347_v46  ;;  %518 = vmatpush.msra.mxu2 %v346_v47  ;;  %v1716_v46 = vld [vmem:[%s2330_s2 + $0x68] sm:$0xff]  ;;  %v1717_v47 = vld [vmem:[%s2330_s2 + $0x70] sm:$0xff] }
  0xb3   : > { %1697 = vmatmul.msk.f32.vlgmr.msra.gmra.mxu3 %vm456_vm10, %v354_v48  ;;  %1696 = vmatmul.msk.f32.vlgmr.msra.gmra.mxu2 %vm456_vm10, %v354_v48  ;;  %v1718_v48 = vld [vmem:[%s2330_s2 + $0x78] sm:$0xff] }
  0xb4   : > { %v395_v49 = vpop.f32.mrf.mxu2  ;;  %v424_v50 = vpop.f32.mrf.mxu3 }
  0xb5   : > { %v442_v51 = vmul.f32 0.01, %v395_v49  ;;  %v443_v52 = vmul.f32 0.01, %v424_v50  ;;  %vm434_vm13 = vcmp.gt.f32.partialorder %v395_v49, 0.0  ;;  %vm435_vm14 = vcmp.gt.f32.partialorder %v424_v50, 0.0 }
  0xb7   : > { %v450_v63 = vsel %vm434_vm13, %v395_v49, %v442_v51  ;;  %v451_v0 = vsel %vm435_vm14, %v424_v50, %v443_v52 }
  0xbc   : > { %v398_v53 = vpop.f32.mrf.mxu2  ;;  %v427_v54 = vpop.f32.mrf.mxu3 }
  0xbd   : > { %v444_v55 = vmul.f32 0.01, %v398_v53  ;;  %v445_v56 = vmul.f32 0.01, %v427_v54  ;;  %vm436_vm11 = vcmp.gt.f32.partialorder %v398_v53, 0.0  ;;  %vm437_vm12 = vcmp.gt.f32.partialorder %v427_v54, 0.0 }
  0xbf   : > { %v452_v59 = vsel %vm436_vm11, %v398_v53, %v444_v55  ;;  %v453_v60 = vsel %vm437_vm12, %v427_v54, %v445_v56 }
  0xc0   : > { %472 = vmatpush.msrb.mxu0 %v452_v59  ;;  %492 = vmatpush.msrb.mxu1 %v453_v60 }
  0xc2   : > { %473 = vmatpush.msrb.mxu0 %v450_v63  ;;  %493 = vmatpush.msrb.mxu1 %v451_v0 }
  0xc4   : > { %474 = vmatpush.msrb.mxu0 %v448_v1  ;;  %494 = vmatpush.msrb.mxu1 %v449_v2 }
  0xc6   : > { %475 = vmatpush.msrb.mxu0 %v446_v12  ;;  %495 = vmatpush.msrb.mxu1 %v447_v13 }
  0xc7   : > { %1694 = vmatmul.msk.f32.vlgmr.msrb.gmra.mxu0 %vm456_vm10, %v1693_v7  ;;  %1695 = vmatmul.msk.f32.vlgmr.msrb.gmra.mxu1 %vm456_vm10, %v1693_v7 }
  0xc8   : > { %1702 = vmatpush.msk.msra.mxu0 %vm265_vm0, %v1928_v3  ;;  %1707 = vmatpush.msk.msra.mxu1 %vm265_vm0, %v1930_v4 }
  0xca   : > { %573 = vmatpush.msra.mxu0 %v1932_v5  ;;  %602 = vmatpush.msra.mxu1 %v1934_v6 }
  0xcc   : > { %574 = vmatpush.msra.mxu0 %v1940_v8  ;;  %603 = vmatpush.msra.mxu1 %v1942_v9 }
  0xce   : > { %575 = vmatpush.msra.mxu0 %v1950_v10  ;;  %604 = vmatpush.msra.mxu1 %v1952_v11 }
  0xcf   : > { %1703 = vmatmul.msk.f32.vlgmr.msra.gmra.mxu0 %vm252_vm1, %v1698_v14  ;;  %1708 = vmatmul.msk.f32.vlgmr.msra.gmra.mxu1 %vm252_vm1, %v1698_v14 }
  0xd7   : > { %1704 = vmatmul.msk.f32.gmra.mxu0 %vm252_vm1, %v1699_v15  ;;  %1709 = vmatmul.msk.f32.gmra.mxu1 %vm252_vm1, %v1699_v15 }
  0xdf   : > { %1705 = vmatmul.msk.f32.gmra.mxu0 %vm252_vm1, %v1700_v16  ;;  %1710 = vmatmul.msk.f32.gmra.mxu1 %vm252_vm1, %v1700_v16 }
  0xe7   : > { %1706 = vmatmul.msk.f32.gmra.mxu0 %vm252_vm1, %v1701_v17  ;;  %1711 = vmatmul.msk.f32.gmra.mxu1 %vm252_vm1, %v1701_v17 }
 0x136   : > { %v540_v49 = vpop.f32.mrf.mxu3  ;;  %v520_v50 = vpop.f32.mrf.mxu2 }
 0x144   : > { %v2064_v18 = vpop.f32.mrf.mxu0  ;;  %v2066_v19 = vpop.f32.mrf.mxu1 }
 0x145   : > { %v541_v51 = vadd.f32 %v540_v49, %v2066_v19  ;;  %v521_v52 = vadd.f32 %v520_v50, %v2064_v18 }
 0x14c   : > { %v577_v20 = vpop.f32.mrf.mxu0  ;;  %v606_v21 = vpop.f32.mrf.mxu1 }
 0x14d   : > { %v626_v36 = vmul.f32 0.01, %v577_v20  ;;  %v627_v37 = vmul.f32 0.01, %v606_v21  ;;  %vm618_vm12 = vcmp.gt.f32.partialorder %v577_v20, 0.0  ;;  %vm619_vm13 = vcmp.gt.f32.partialorder %v606_v21, 0.0 }
 0x14f   : > { %v634_v43 = vsel %vm618_vm12, %v577_v20, %v626_v36  ;;  %v635_v44 = vsel %vm619_vm13, %v606_v21, %v627_v37 }
 0x154   : > { %v580_v22 = vpop.f32.mrf.mxu0  ;;  %v609_v23 = vpop.f32.mrf.mxu1 }
 0x155   : > { %v628_v32 = vmul.f32 0.01, %v580_v22  ;;  %v629_v33 = vmul.f32 0.01, %v609_v23  ;;  %vm620_vm9 = vcmp.gt.f32.partialorder %v580_v22, 0.0  ;;  %vm621_vm11 = vcmp.gt.f32.partialorder %v609_v23, 0.0 }
 0x157   : > { %v636_v40 = vsel %vm620_vm9, %v580_v22, %v628_v32  ;;  %v637_v41 = vsel %vm621_vm11, %v609_v23, %v629_v33  ;;  %v1729_v23 = vld [vmem:[%s2331_s3 + $0x3] sm:$0x1] }
 0x15c   : > { %v583_v24 = vpop.f32.mrf.mxu0  ;;  %v612_v25 = vpop.f32.mrf.mxu1 }
 0x15d   : > { %v630_v26 = vmul.f32 0.01, %v583_v24  ;;  %v631_v27 = vmul.f32 0.01, %v612_v25  ;;  %vm622_vm7 = vcmp.gt.f32.partialorder %v583_v24, 0.0  ;;  %vm623_vm8 = vcmp.gt.f32.partialorder %v612_v25, 0.0 }
 0x15f   : > { %v638_v38 = vsel %vm622_vm7, %v583_v24, %v630_v26  ;;  %v639_v39 = vsel %vm623_vm8, %v612_v25, %v631_v27  ;;  %v1732_v26 = vld [vmem:[%s2330_s2 + $0x80] sm:$0xff]  ;;  %v1733_v27 = vld [vmem:[%s2330_s2 + $0x88] sm:$0xff] }
 0x164   : > { %v586_v28 = vpop.f32.mrf.mxu0  ;;  %v615_v29 = vpop.f32.mrf.mxu1 }
 0x165   : > { %vm624_vm5 = vcmp.gt.f32.partialorder %v586_v28, 0.0  ;;  %v632_v30 = vmul.f32 0.01, %v586_v28  ;;  %vm625_vm6 = vcmp.gt.f32.partialorder %v615_v29, 0.0  ;;  %v633_v31 = vmul.f32 0.01, %v615_v29 }
 0x167   : > { %v640_v34 = vsel %vm624_vm5, %v586_v28, %v632_v30  ;;  %v641_v35 = vsel %vm625_vm6, %v615_v29, %v633_v31  ;;  %v1734_v28 = vld [vmem:[%s2330_s2 + $0x90] sm:$0xff]  ;;  %v1735_v29 = vld [vmem:[%s2330_s2 + $0x98] sm:$0xff] }
 0x168   : > { %659 = vmatpush.msrb.mxu2 %v640_v34  ;;  %679 = vmatpush.msrb.mxu3 %v641_v35 }
 0x16a   : > { %660 = vmatpush.msrb.mxu2 %v638_v38  ;;  %680 = vmatpush.msrb.mxu3 %v639_v39 }
 0x16c   : > { %661 = vmatpush.msrb.mxu2 %v636_v40  ;;  %681 = vmatpush.msrb.mxu3 %v637_v41 }
 0x16e   : > { %662 = vmatpush.msrb.mxu2 %v634_v43  ;;  %682 = vmatpush.msrb.mxu3 %v635_v44 }
 0x16f   : > { %1713 = vmatmul.msk.f32.vlgmr.msrb.gmra.mxu2 %vm456_vm10, %v1712_v42  ;;  %1714 = vmatmul.msk.f32.vlgmr.msrb.gmra.mxu3 %vm456_vm10, %v1712_v42 }
 0x170   : > { %1719 = vmatpush.msk.msra.mxu2 %vm265_vm0, %v1928_v3  ;;  %1724 = vmatpush.msk.msra.mxu3 %vm265_vm0, %v1930_v4 }
 0x172   : > { %719 = vmatpush.msra.mxu2 %v1932_v5  ;;  %748 = vmatpush.msra.mxu3 %v1934_v6 }
 0x174   : > { %720 = vmatpush.msra.mxu2 %v1940_v8  ;;  %749 = vmatpush.msra.mxu3 %v1942_v9 }
 0x176   : > { %721 = vmatpush.msra.mxu2 %v1950_v10  ;;  %750 = vmatpush.msra.mxu3 %v1952_v11 }
 0x177   : > { %1720 = vmatmul.msk.f32.vlgmr.msra.gmra.mxu2 %vm252_vm1, %v1715_v45  ;;  %1725 = vmatmul.msk.f32.vlgmr.msra.gmra.mxu3 %vm252_vm1, %v1715_v45 }
 0x17f   : > { %1721 = vmatmul.msk.f32.gmra.mxu2 %vm252_vm1, %v1716_v46  ;;  %1726 = vmatmul.msk.f32.gmra.mxu3 %vm252_vm1, %v1716_v46 }
 0x187   : > { %1722 = vmatmul.msk.f32.gmra.mxu2 %vm252_vm1, %v1717_v47  ;;  %1727 = vmatmul.msk.f32.gmra.mxu3 %vm252_vm1, %v1717_v47 }
 0x18f   : > { %1723 = vmatmul.msk.f32.gmra.mxu2 %vm252_vm1, %v1718_v48  ;;  %1728 = vmatmul.msk.f32.gmra.mxu3 %vm252_vm1, %v1718_v48 }
 0x1f2   : > { %v664_v53 = vpop.f32.mrf.mxu2  ;;  %v684_v54 = vpop.f32.mrf.mxu3 }
 0x1f3   : > { %v2105_v55 = vadd.f32 %v664_v53, %v521_v52  ;;  %v2107_v56 = vadd.f32 %v684_v54, %v541_v51 }
 0x1fa   : > { %v723_v57 = vpop.f32.mrf.mxu2  ;;  %v752_v58 = vpop.f32.mrf.mxu3 }
 0x1fb   : > { %v772_v17 = vmul.f32 0.01, %v723_v57  ;;  %v773_v18 = vmul.f32 0.01, %v752_v58  ;;  %vm764_vm6 = vcmp.gt.f32.partialorder %v723_v57, 0.0  ;;  %vm765_vm7 = vcmp.gt.f32.partialorder %v752_v58, 0.0 }
 0x1fd   : > { %v780_v24 = vsel %vm764_vm6, %v723_v57, %v772_v17  ;;  %v781_v25 = vsel %vm765_vm7, %v752_v58, %v773_v18 }
 0x202   : > { %v726_v59 = vpop.f32.mrf.mxu2  ;;  %v755_v60 = vpop.f32.mrf.mxu3 }
 0x203   : > { %v774_v13 = vmul.f32 0.01, %v726_v59  ;;  %v775_v14 = vmul.f32 0.01, %v755_v60  ;;  %vm766_vm4 = vcmp.gt.f32.partialorder %v726_v59, 0.0  ;;  %vm767_vm5 = vcmp.gt.f32.partialorder %v755_v60, 0.0 }
 0x205   : > { %v782_v21 = vsel %vm766_vm4, %v726_v59, %v774_v13  ;;  %v783_v22 = vsel %vm767_vm5, %v755_v60, %v775_v14  ;;  %v1749_v59 = vld [vmem:[%s2330_s2 + $0xa0] sm:$0xff]  ;;  %v1750_v60 = vld [vmem:[%s2330_s2 + $0xa8] sm:$0xff] }
 0x20a   : > { %v729_v61 = vpop.f32.mrf.mxu2  ;;  %v758_v62 = vpop.f32.mrf.mxu3 }
 0x20b   : > { %v776_v63 = vmul.f32 0.01, %v729_v61  ;;  %v777_v0 = vmul.f32 0.01, %v758_v62  ;;  %vm768_vm2 = vcmp.gt.f32.partialorder %v729_v61, 0.0  ;;  %vm769_vm3 = vcmp.gt.f32.partialorder %v758_v62, 0.0 }
 0x20d   : > { %v784_v19 = vsel %vm768_vm2, %v729_v61, %v776_v63  ;;  %v785_v20 = vsel %vm769_vm3, %v758_v62, %v777_v0  ;;  %v1751_v61 = vld [vmem:[%s2330_s2 + $0xb0] sm:$0xff]  ;;  %v1752_v62 = vld [vmem:[%s2330_s2 + $0xb8] sm:$0xff] }
 0x212   : > { %v732_v1 = vpop.f32.mrf.mxu2  ;;  %v761_v2 = vpop.f32.mrf.mxu3 }
 0x213   : > { %vm770_vm14 = vcmp.gt.f32.partialorder %v732_v1, 0.0  ;;  %v778_v7 = vmul.f32 0.01, %v732_v1  ;;  %vm771_vm15 = vcmp.gt.f32.partialorder %v761_v2, 0.0  ;;  %v779_v12 = vmul.f32 0.01, %v761_v2 }
 0x215   : > { %v786_v15 = vsel %vm770_vm14, %v732_v1, %v778_v7  ;;  %v787_v16 = vsel %vm771_vm15, %v761_v2, %v779_v12 }
 0x216   : > { %805 = vmatpush.msrb.mxu0 %v786_v15  ;;  %825 = vmatpush.msrb.mxu1 %v787_v16 }
 0x218   : > { %806 = vmatpush.msrb.mxu0 %v784_v19  ;;  %826 = vmatpush.msrb.mxu1 %v785_v20 }
 0x21a   : > { %807 = vmatpush.msrb.mxu0 %v782_v21  ;;  %827 = vmatpush.msrb.mxu1 %v783_v22 }
 0x21c   : > { %808 = vmatpush.msrb.mxu0 %v780_v24  ;;  %828 = vmatpush.msrb.mxu1 %v781_v25 }
 0x21d   : > { %1730 = vmatmul.msk.f32.vlgmr.msrb.gmra.mxu0 %vm456_vm10, %v1729_v23  ;;  %1731 = vmatmul.msk.f32.vlgmr.msrb.gmra.mxu1 %vm456_vm10, %v1729_v23 }
 0x21e   : > { %1736 = vmatpush.msk.msra.mxu0 %vm265_vm0, %v1928_v3  ;;  %1741 = vmatpush.msk.msra.mxu1 %vm265_vm0, %v1930_v4 }
 0x220   : > { %865 = vmatpush.msra.mxu0 %v1932_v5  ;;  %894 = vmatpush.msra.mxu1 %v1934_v6 }
 0x222   : > { %866 = vmatpush.msra.mxu0 %v1940_v8  ;;  %895 = vmatpush.msra.mxu1 %v1942_v9 }
 0x224   : > { %867 = vmatpush.msra.mxu0 %v1950_v10  ;;  %896 = vmatpush.msra.mxu1 %v1952_v11 }
 0x225   : > { %1737 = vmatmul.msk.f32.vlgmr.msra.gmra.mxu0 %vm252_vm1, %v1732_v26  ;;  %1742 = vmatmul.msk.f32.vlgmr.msra.gmra.mxu1 %vm252_vm1, %v1732_v26 }
 0x22d   : > { %1738 = vmatmul.msk.f32.gmra.mxu0 %vm252_vm1, %v1733_v27  ;;  %1743 = vmatmul.msk.f32.gmra.mxu1 %vm252_vm1, %v1733_v27 }
 0x235   : > { %1739 = vmatmul.msk.f32.gmra.mxu0 %vm252_vm1, %v1734_v28  ;;  %1744 = vmatmul.msk.f32.gmra.mxu1 %vm252_vm1, %v1734_v28 }
 0x23d   : > { %1740 = vmatmul.msk.f32.gmra.mxu0 %vm252_vm1, %v1735_v29  ;;  %1745 = vmatmul.msk.f32.gmra.mxu1 %vm252_vm1, %v1735_v29 }
 0x29a   : > { %v810_v30 = vpop.f32.mrf.mxu0  ;;  %v830_v31 = vpop.f32.mrf.mxu1 }
 0x29b   : > { %v2145_v32 = vadd.f32 %v810_v30, %v2105_v55  ;;  %v2148_v33 = vadd.f32 %v830_v31, %v2107_v56  ;;  %v1746_v56 = vld [vmem:[%s2331_s3 + $0x4] sm:$0x1] }
 0x2a2   : > { %v869_v34 = vpop.f32.mrf.mxu0  ;;  %v898_v35 = vpop.f32.mrf.mxu1 }
 0x2a3   : > { %v918_v50 = vmul.f32 0.01, %v869_v34  ;;  %v919_v51 = vmul.f32 0.01, %v898_v35  ;;  %vm910_vm15 = vcmp.gt.f32.partialorder %v869_v34, 0.0  ;;  %vm911_vm2 = vcmp.gt.f32.partialorder %v898_v35, 0.0 }
 0x2a5   : > { %v926_v57 = vsel %vm910_vm15, %v869_v34, %v918_v50  ;;  %v927_v58 = vsel %vm911_vm2, %v898_v35, %v919_v51 }
 0x2aa   : > { %v872_v36 = vpop.f32.mrf.mxu0  ;;  %v901_v37 = vpop.f32.mrf.mxu1 }
 0x2ab   : > { %v920_v46 = vmul.f32 0.01, %v872_v36  ;;  %v921_v47 = vmul.f32 0.01, %v901_v37  ;;  %vm912_vm13 = vcmp.gt.f32.partialorder %v872_v36, 0.0  ;;  %vm913_vm14 = vcmp.gt.f32.partialorder %v901_v37, 0.0 }
 0x2ad   : > { %v928_v54 = vsel %vm912_vm13, %v872_v36, %v920_v46  ;;  %v929_v55 = vsel %vm913_vm14, %v901_v37, %v921_v47  ;;  %v1766_v36 = vld [vmem:[%s2330_s2 + $0xc0] sm:$0xff]  ;;  %v1767_v37 = vld [vmem:[%s2330_s2 + $0xc8] sm:$0xff] }
 0x2b2   : > { %v875_v38 = vpop.f32.mrf.mxu0  ;;  %v904_v39 = vpop.f32.mrf.mxu1 }
 0x2b3   : > { %v922_v40 = vmul.f32 0.01, %v875_v38  ;;  %v923_v41 = vmul.f32 0.01, %v904_v39  ;;  %vm914_vm11 = vcmp.gt.f32.partialorder %v875_v38, 0.0  ;;  %vm915_vm12 = vcmp.gt.f32.partialorder %v904_v39, 0.0 }
 0x2b5   : > { %v930_v52 = vsel %vm914_vm11, %v875_v38, %v922_v40  ;;  %v931_v53 = vsel %vm915_vm12, %v904_v39, %v923_v41  ;;  %v1768_v38 = vld [vmem:[%s2330_s2 + $0xd0] sm:$0xff]  ;;  %v1769_v39 = vld [vmem:[%s2330_s2 + $0xd8] sm:$0xff] }
 0x2ba   : > { %v878_v42 = vpop.f32.mrf.mxu0  ;;  %v907_v43 = vpop.f32.mrf.mxu1 }
 0x2bb   : > { %vm916_vm8 = vcmp.gt.f32.partialorder %v878_v42, 0.0  ;;  %v924_v44 = vmul.f32 0.01, %v878_v42  ;;  %vm917_vm9 = vcmp.gt.f32.partialorder %v907_v43, 0.0  ;;  %v925_v45 = vmul.f32 0.01, %v907_v43 }
 0x2bd   : > { %v932_v48 = vsel %vm916_vm8, %v878_v42, %v924_v44  ;;  %v933_v49 = vsel %vm917_vm9, %v907_v43, %v925_v45 }
 0x2be   : > { %951 = vmatpush.msrb.mxu2 %v932_v48  ;;  %971 = vmatpush.msrb.mxu3 %v933_v49 }
 0x2c0   : > { %952 = vmatpush.msrb.mxu2 %v930_v52  ;;  %972 = vmatpush.msrb.mxu3 %v931_v53 }
 0x2c2   : > { %953 = vmatpush.msrb.mxu2 %v928_v54  ;;  %973 = vmatpush.msrb.mxu3 %v929_v55 }
 0x2c4   : > { %954 = vmatpush.msrb.mxu2 %v926_v57  ;;  %974 = vmatpush.msrb.mxu3 %v927_v58 }
 0x2c5   : > { %1747 = vmatmul.msk.f32.vlgmr.msrb.gmra.mxu2 %vm456_vm10, %v1746_v56  ;;  %1748 = vmatmul.msk.f32.vlgmr.msrb.gmra.mxu3 %vm456_vm10, %v1746_v56 }
 0x2c6   : > { %1753 = vmatpush.msk.msra.mxu2 %vm265_vm0, %v1928_v3  ;;  %1758 = vmatpush.msk.msra.mxu3 %vm265_vm0, %v1930_v4 }
 0x2c8   : > { %1011 = vmatpush.msra.mxu2 %v1932_v5  ;;  %1040 = vmatpush.msra.mxu3 %v1934_v6 }
 0x2ca   : > { %1012 = vmatpush.msra.mxu2 %v1940_v8  ;;  %1041 = vmatpush.msra.mxu3 %v1942_v9 }
 0x2cc   : > { %1013 = vmatpush.msra.mxu2 %v1950_v10  ;;  %1042 = vmatpush.msra.mxu3 %v1952_v11 }
 0x2cd   : > { %1754 = vmatmul.msk.f32.vlgmr.msra.gmra.mxu2 %vm252_vm1, %v1749_v59  ;;  %1759 = vmatmul.msk.f32.vlgmr.msra.gmra.mxu3 %vm252_vm1, %v1749_v59 }
 0x2d5   : > { %1755 = vmatmul.msk.f32.gmra.mxu2 %vm252_vm1, %v1750_v60  ;;  %1760 = vmatmul.msk.f32.gmra.mxu3 %vm252_vm1, %v1750_v60 }
 0x2dd   : > { %1756 = vmatmul.msk.f32.gmra.mxu2 %vm252_vm1, %v1751_v61  ;;  %1761 = vmatmul.msk.f32.gmra.mxu3 %vm252_vm1, %v1751_v61 }
 0x2e5   : > { %1757 = vmatmul.msk.f32.gmra.mxu2 %vm252_vm1, %v1752_v62  ;;  %1762 = vmatmul.msk.f32.gmra.mxu3 %vm252_vm1, %v1752_v62 }
 0x348   : > { %v956_v63 = vpop.f32.mrf.mxu2  ;;  %v976_v0 = vpop.f32.mrf.mxu3 }
 0x349   : > { %v2186_v1 = vadd.f32 %v956_v63, %v2145_v32  ;;  %v2189_v2 = vadd.f32 %v976_v0, %v2148_v33  ;;  %v1763_v33 = vld [vmem:[%s2331_s3 + $0x5] sm:$0x1] }
 0x350   : > { %v1015_v7 = vpop.f32.mrf.mxu2  ;;  %v1044_v12 = vpop.f32.mrf.mxu3 }
 0x351   : > { %v1064_v27 = vmul.f32 0.01, %v1015_v7  ;;  %v1065_v28 = vmul.f32 0.01, %v1044_v12  ;;  %vm1056_vm9 = vcmp.gt.f32.partialorder %v1015_v7, 0.0  ;;  %vm1057_vm11 = vcmp.gt.f32.partialorder %v1044_v12, 0.0 }
 0x353   : > { %v1072_v34 = vsel %vm1056_vm9, %v1015_v7, %v1064_v27  ;;  %v1073_v35 = vsel %vm1057_vm11, %v1044_v12, %v1065_v28 }
 0x358   : > { %v1018_v13 = vpop.f32.mrf.mxu2  ;;  %v1047_v14 = vpop.f32.mrf.mxu3 }
 0x359   : > { %v1066_v23 = vmul.f32 0.01, %v1018_v13  ;;  %v1067_v24 = vmul.f32 0.01, %v1047_v14  ;;  %vm1058_vm7 = vcmp.gt.f32.partialorder %v1018_v13, 0.0  ;;  %vm1059_vm8 = vcmp.gt.f32.partialorder %v1047_v14, 0.0 }
 0x35b   : > { %v1074_v31 = vsel %vm1058_vm7, %v1018_v13, %v1066_v23  ;;  %v1075_v32 = vsel %vm1059_vm8, %v1047_v14, %v1067_v24  ;;  %v1783_v13 = vld [vmem:[%s2330_s2 + $0xe0] sm:$0xff]  ;;  %v1784_v14 = vld [vmem:[%s2330_s2 + $0xe8] sm:$0xff] }
 0x360   : > { %v1021_v15 = vpop.f32.mrf.mxu2  ;;  %v1050_v16 = vpop.f32.mrf.mxu3 }
 0x361   : > { %v1068_v17 = vmul.f32 0.01, %v1021_v15  ;;  %v1069_v18 = vmul.f32 0.01, %v1050_v16  ;;  %vm1060_vm5 = vcmp.gt.f32.partialorder %v1021_v15, 0.0  ;;  %vm1061_vm6 = vcmp.gt.f32.partialorder %v1050_v16, 0.0 }
 0x363   : > { %v1076_v29 = vsel %vm1060_vm5, %v1021_v15, %v1068_v17  ;;  %v1077_v30 = vsel %vm1061_vm6, %v1050_v16, %v1069_v18  ;;  %v1785_v15 = vld [vmem:[%s2330_s2 + $0xf0] sm:$0xff]  ;;  %v1786_v16 = vld [vmem:[%s2330_s2 + $0xf8] sm:$0xff] }
 0x368   : > { %v1024_v19 = vpop.f32.mrf.mxu2  ;;  %v1053_v20 = vpop.f32.mrf.mxu3 }
 0x369   : > { %vm1062_vm3 = vcmp.gt.f32.partialorder %v1024_v19, 0.0  ;;  %v1070_v21 = vmul.f32 0.01, %v1024_v19  ;;  %vm1063_vm4 = vcmp.gt.f32.partialorder %v1053_v20, 0.0  ;;  %v1071_v22 = vmul.f32 0.01, %v1053_v20 }
 0x36b   : > { %v1078_v25 = vsel %vm1062_vm3, %v1024_v19, %v1070_v21  ;;  %v1079_v26 = vsel %vm1063_vm4, %v1053_v20, %v1071_v22 }
 0x36c   : > { %1097 = vmatpush.msrb.mxu0 %v1078_v25  ;;  %1117 = vmatpush.msrb.mxu1 %v1079_v26 }
 0x36e   : > { %1098 = vmatpush.msrb.mxu0 %v1076_v29  ;;  %1118 = vmatpush.msrb.mxu1 %v1077_v30 }
 0x370   : > { %1099 = vmatpush.msrb.mxu0 %v1074_v31  ;;  %1119 = vmatpush.msrb.mxu1 %v1075_v32 }
 0x372   : > { %1100 = vmatpush.msrb.mxu0 %v1072_v34  ;;  %1120 = vmatpush.msrb.mxu1 %v1073_v35 }
 0x373   : > { %1764 = vmatmul.msk.f32.vlgmr.msrb.gmra.mxu0 %vm456_vm10, %v1763_v33  ;;  %1765 = vmatmul.msk.f32.vlgmr.msrb.gmra.mxu1 %vm456_vm10, %v1763_v33 }
 0x374   : > { %1770 = vmatpush.msk.msra.mxu0 %vm265_vm0, %v1928_v3  ;;  %1775 = vmatpush.msk.msra.mxu1 %vm265_vm0, %v1930_v4 }
 0x376   : > { %1157 = vmatpush.msra.mxu0 %v1932_v5  ;;  %1186 = vmatpush.msra.mxu1 %v1934_v6 }
 0x378   : > { %1158 = vmatpush.msra.mxu0 %v1940_v8  ;;  %1187 = vmatpush.msra.mxu1 %v1942_v9 }
 0x37a   : > { %1159 = vmatpush.msra.mxu0 %v1950_v10  ;;  %1188 = vmatpush.msra.mxu1 %v1952_v11 }
 0x37b   : > { %1771 = vmatmul.msk.f32.vlgmr.msra.gmra.mxu0 %vm252_vm1, %v1766_v36  ;;  %1776 = vmatmul.msk.f32.vlgmr.msra.gmra.mxu1 %vm252_vm1, %v1766_v36 }
 0x383   : > { %1772 = vmatmul.msk.f32.gmra.mxu0 %vm252_vm1, %v1767_v37  ;;  %1777 = vmatmul.msk.f32.gmra.mxu1 %vm252_vm1, %v1767_v37 }
 0x38b   : > { %1773 = vmatmul.msk.f32.gmra.mxu0 %vm252_vm1, %v1768_v38  ;;  %1778 = vmatmul.msk.f32.gmra.mxu1 %vm252_vm1, %v1768_v38 }
 0x393   : > { %1774 = vmatmul.msk.f32.gmra.mxu0 %vm252_vm1, %v1769_v39  ;;  %1779 = vmatmul.msk.f32.gmra.mxu1 %vm252_vm1, %v1769_v39 }
 0x3f0   : > { %v1102_v40 = vpop.f32.mrf.mxu0  ;;  %v1122_v41 = vpop.f32.mrf.mxu1 }
 0x3f1   : > { %v2227_v42 = vadd.f32 %v1102_v40, %v2186_v1  ;;  %v2230_v43 = vadd.f32 %v1122_v41, %v2189_v2  ;;  %v1780_v2 = vld [vmem:[%s2331_s3 + $0x6] sm:$0x1] }
 0x3f8   : > { %v1161_v44 = vpop.f32.mrf.mxu0  ;;  %v1190_v45 = vpop.f32.mrf.mxu1 }
 0x3f9   : > { %v1210_v60 = vmul.f32 0.01, %v1161_v44  ;;  %v1211_v61 = vmul.f32 0.01, %v1190_v45  ;;  %vm1202_vm4 = vcmp.gt.f32.partialorder %v1161_v44, 0.0  ;;  %vm1203_vm5 = vcmp.gt.f32.partialorder %v1190_v45, 0.0 }
 0x3fb   : > { %v1218_v7 = vsel %vm1202_vm4, %v1161_v44, %v1210_v60  ;;  %v1219_v12 = vsel %vm1203_vm5, %v1190_v45, %v1211_v61 }
 0x400   : > { %v1164_v46 = vpop.f32.mrf.mxu0  ;;  %v1193_v47 = vpop.f32.mrf.mxu1 }
 0x401   : > { %v1212_v56 = vmul.f32 0.01, %v1164_v46  ;;  %v1213_v57 = vmul.f32 0.01, %v1193_v47  ;;  %vm1204_vm2 = vcmp.gt.f32.partialorder %v1164_v46, 0.0  ;;  %vm1205_vm3 = vcmp.gt.f32.partialorder %v1193_v47, 0.0 }
 0x403   : > { %v1220_v0 = vsel %vm1204_vm2, %v1164_v46, %v1212_v56  ;;  %v1221_v1 = vsel %vm1205_vm3, %v1193_v47, %v1213_v57  ;;  %v1800_v46 = vld [vmem:[%s2330_s2 + $0x100] sm:$0xff] }
 0x408   : > { %v1167_v48 = vpop.f32.mrf.mxu0  ;;  %v1196_v49 = vpop.f32.mrf.mxu1 }
 0x409   : > { %v1214_v50 = vmul.f32 0.01, %v1167_v48  ;;  %v1215_v51 = vmul.f32 0.01, %v1196_v49  ;;  %vm1206_vm14 = vcmp.gt.f32.partialorder %v1167_v48, 0.0  ;;  %vm1207_vm15 = vcmp.gt.f32.partialorder %v1196_v49, 0.0 }
 0x40b   : > { %v1222_v62 = vsel %vm1206_vm14, %v1167_v48, %v1214_v50  ;;  %v1223_v63 = vsel %vm1207_vm15, %v1196_v49, %v1215_v51 }
 0x410   : > { %v1170_v52 = vpop.f32.mrf.mxu0  ;;  %v1199_v53 = vpop.f32.mrf.mxu1 }
 0x411   : > { %vm1208_vm12 = vcmp.gt.f32.partialorder %v1170_v52, 0.0  ;;  %v1216_v54 = vmul.f32 0.01, %v1170_v52  ;;  %vm1209_vm13 = vcmp.gt.f32.partialorder %v1199_v53, 0.0  ;;  %v1217_v55 = vmul.f32 0.01, %v1199_v53 }
 0x413   : > { %v1224_v58 = vsel %vm1208_vm12, %v1170_v52, %v1216_v54  ;;  %v1225_v59 = vsel %vm1209_vm13, %v1199_v53, %v1217_v55 }
 0x414   : > { %1243 = vmatpush.msrb.mxu2 %v1224_v58  ;;  %1263 = vmatpush.msrb.mxu3 %v1225_v59 }
 0x416   : > { %1244 = vmatpush.msrb.mxu2 %v1222_v62  ;;  %1264 = vmatpush.msrb.mxu3 %v1223_v63 }
 0x418   : > { %1245 = vmatpush.msrb.mxu2 %v1220_v0  ;;  %1265 = vmatpush.msrb.mxu3 %v1221_v1 }
 0x41a   : > { %1246 = vmatpush.msrb.mxu2 %v1218_v7  ;;  %1266 = vmatpush.msrb.mxu3 %v1219_v12  ;;  %v1814_v12 = vld [vmem:[%s2331_s3 + $0x8] sm:$0x1] }
 0x41b   : > { %1781 = vmatmul.msk.f32.vlgmr.msrb.gmra.mxu2 %vm456_vm10, %v1780_v2  ;;  %1782 = vmatmul.msk.f32.vlgmr.msrb.gmra.mxu3 %vm456_vm10, %v1780_v2 }
 0x41c   : > { %1787 = vmatpush.msk.msra.mxu2 %vm265_vm0, %v1928_v3  ;;  %1792 = vmatpush.msk.msra.mxu3 %vm265_vm0, %v1930_v4 }
 0x41e   : > { %1303 = vmatpush.msra.mxu2 %v1932_v5  ;;  %1332 = vmatpush.msra.mxu3 %v1934_v6 }
 0x420   : > { %1304 = vmatpush.msra.mxu2 %v1940_v8  ;;  %1333 = vmatpush.msra.mxu3 %v1942_v9 }
 0x422   : > { %1305 = vmatpush.msra.mxu2 %v1950_v10  ;;  %1334 = vmatpush.msra.mxu3 %v1952_v11 }
 0x423   : > { %1788 = vmatmul.msk.f32.vlgmr.msra.gmra.mxu2 %vm252_vm1, %v1783_v13  ;;  %1793 = vmatmul.msk.f32.vlgmr.msra.gmra.mxu3 %vm252_vm1, %v1783_v13 }
 0x42b   : > { %1789 = vmatmul.msk.f32.gmra.mxu2 %vm252_vm1, %v1784_v14  ;;  %1794 = vmatmul.msk.f32.gmra.mxu3 %vm252_vm1, %v1784_v14 }
 0x433   : > { %1790 = vmatmul.msk.f32.gmra.mxu2 %vm252_vm1, %v1785_v15  ;;  %1795 = vmatmul.msk.f32.gmra.mxu3 %vm252_vm1, %v1785_v15 }
 0x43b   : > { %1791 = vmatmul.msk.f32.gmra.mxu2 %vm252_vm1, %v1786_v16  ;;  %1796 = vmatmul.msk.f32.gmra.mxu3 %vm252_vm1, %v1786_v16  ;;  %v1566_v16 = vstv %s1565_s22 }
 0x49e   : > { %v1248_v17 = vpop.f32.mrf.mxu2  ;;  %v1268_v18 = vpop.f32.mrf.mxu3 }
 0x49f   : > { %v2268_v19 = vadd.f32 %v1248_v17, %v2227_v42  ;;  %v2271_v20 = vadd.f32 %v1268_v18, %v2230_v43  ;;  %v1797_v43 = vld [vmem:[%s2331_s3 + $0x7] sm:$0x1] }
 0x4a6   : > { %v1307_v21 = vpop.f32.mrf.mxu2  ;;  %v1336_v22 = vpop.f32.mrf.mxu3 }
 0x4a7   : > { %v1356_v37 = vmul.f32 0.01, %v1307_v21  ;;  %v1357_v38 = vmul.f32 0.01, %v1336_v22  ;;  %vm1348_vm13 = vcmp.gt.f32.partialorder %v1307_v21, 0.0  ;;  %vm1349_vm14 = vcmp.gt.f32.partialorder %v1336_v22, 0.0 }
 0x4a9   : > { %v1364_v44 = vsel %vm1348_vm13, %v1307_v21, %v1356_v37  ;;  %v1365_v45 = vsel %vm1349_vm14, %v1336_v22, %v1357_v38 }
 0x4ae   : > { %v1310_v23 = vpop.f32.mrf.mxu2  ;;  %v1339_v24 = vpop.f32.mrf.mxu3 }
 0x4af   : > { %v1358_v33 = vmul.f32 0.01, %v1310_v23  ;;  %v1359_v34 = vmul.f32 0.01, %v1339_v24  ;;  %vm1350_vm11 = vcmp.gt.f32.partialorder %v1310_v23, 0.0  ;;  %vm1351_vm12 = vcmp.gt.f32.partialorder %v1339_v24, 0.0 }
 0x4b1   : > { %v1366_v41 = vsel %vm1350_vm11, %v1310_v23, %v1358_v33  ;;  %v1367_v42 = vsel %vm1351_vm12, %v1339_v24, %v1359_v34 }
 0x4b6   : > { %v1313_v25 = vpop.f32.mrf.mxu2  ;;  %v1342_v26 = vpop.f32.mrf.mxu3 }
 0x4b7   : > { %v1360_v27 = vmul.f32 0.01, %v1313_v25  ;;  %v1361_v28 = vmul.f32 0.01, %v1342_v26  ;;  %vm1352_vm8 = vcmp.gt.f32.partialorder %v1313_v25, 0.0  ;;  %vm1353_vm9 = vcmp.gt.f32.partialorder %v1342_v26, 0.0 }
 0x4b9   : > { %v1368_v39 = vsel %vm1352_vm8, %v1313_v25, %v1360_v27  ;;  %v1369_v40 = vsel %vm1353_vm9, %v1342_v26, %v1361_v28 }
 0x4be   : > { %v1316_v29 = vpop.f32.mrf.mxu2  ;;  %v1345_v30 = vpop.f32.mrf.mxu3 }
 0x4bf   : > { %vm1354_vm6 = vcmp.gt.f32.partialorder %v1316_v29, 0.0  ;;  %v1362_v31 = vmul.f32 0.01, %v1316_v29  ;;  %vm1355_vm7 = vcmp.gt.f32.partialorder %v1345_v30, 0.0  ;;  %v1363_v32 = vmul.f32 0.01, %v1345_v30 }
 0x4c1   : > { %v1370_v35 = vsel %vm1354_vm6, %v1316_v29, %v1362_v31  ;;  %v1371_v36 = vsel %vm1355_vm7, %v1345_v30, %v1363_v32  ;;  %vm1572_vm7 = vcmask 1040384  }
 0x4c2   : > { %1389 = vmatpush.msrb.mxu0 %v1370_v35  ;;  %1409 = vmatpush.msrb.mxu1 %v1371_v36 }
 0x4c4   : > { %1390 = vmatpush.msrb.mxu0 %v1368_v39  ;;  %1410 = vmatpush.msrb.mxu1 %v1369_v40 }
 0x4c6   : > { %1391 = vmatpush.msrb.mxu0 %v1366_v41  ;;  %1411 = vmatpush.msrb.mxu1 %v1367_v42 }
 0x4c8   : > { %1392 = vmatpush.msrb.mxu0 %v1364_v44  ;;  %1412 = vmatpush.msrb.mxu1 %v1365_v45 }
 0x4c9   : > { %1798 = vmatmul.msk.f32.vlgmr.msrb.gmra.mxu0 %vm456_vm10, %v1797_v43  ;;  %1799 = vmatmul.msk.f32.vlgmr.msrb.gmra.mxu1 %vm456_vm10, %v1797_v43 }
 0x4ca   : > { %1804 = vmatpush.msk.msra.mxu0 %vm265_vm0, %v1928_v3  ;;  %1809 = vmatpush.msk.msra.mxu1 %vm265_vm0, %v1930_v4  ;;  %v1801_v3 = vld [vmem:[%s2330_s2 + $0x108] sm:$0xff]  ;;  %v1802_v4 = vld [vmem:[%s2330_s2 + $0x110] sm:$0xff] }
 0x4cc   : > { %1449 = vmatpush.msra.mxu0 %v1932_v5  ;;  %1478 = vmatpush.msra.mxu1 %v1934_v6  ;;  %v1803_v5 = vld [vmem:[%s2330_s2 + $0x118] sm:$0xff] }
 0x4ce   : > { %1450 = vmatpush.msra.mxu0 %v1940_v8  ;;  %1479 = vmatpush.msra.mxu1 %v1942_v9 }
 0x4d0   : > { %1451 = vmatpush.msra.mxu0 %v1950_v10  ;;  %1480 = vmatpush.msra.mxu1 %v1952_v11 }
 0x4d1   : > { %1805 = vmatmul.msk.f32.vlgmr.msra.gmra.mxu0 %vm252_vm1, %v1800_v46  ;;  %1810 = vmatmul.msk.f32.vlgmr.msra.gmra.mxu1 %vm252_vm1, %v1800_v46 }
 0x4d9   : > { %1806 = vmatmul.msk.f32.gmra.mxu0 %vm252_vm1, %v1801_v3  ;;  %1811 = vmatmul.msk.f32.gmra.mxu1 %vm252_vm1, %v1801_v3 }
 0x4e1   : > { %1807 = vmatmul.msk.f32.gmra.mxu0 %vm252_vm1, %v1802_v4  ;;  %1812 = vmatmul.msk.f32.gmra.mxu1 %vm252_vm1, %v1802_v4 }
 0x4e9   : > { %1808 = vmatmul.msk.f32.gmra.mxu0 %vm252_vm1, %v1803_v5  ;;  %1813 = vmatmul.msk.f32.gmra.mxu1 %vm252_vm1, %v1803_v5 }
 0x546   : > { %v1394_v6 = vpop.f32.mrf.mxu0  ;;  %v1414_v8 = vpop.f32.mrf.mxu1 }
 0x547   : > { %v1417_v9 = vadd.f32 %v1394_v6, %v2268_v19  ;;  %v1418_v10 = vadd.f32 %v1414_v8, %v2271_v20  ;;  %v1575_v20 = vlaneseq }
 0x549   : > { %vm1577_vm8 = vcmp.lt.s32.totalorder %v1575_v20, 256 }
 0x54e   : > { %v1453_v11 = vpop.f32.mrf.mxu0  ;;  %v1482_v47 = vpop.f32.mrf.mxu1 }
 0x54f   : > { %v1502_v62 = vmul.f32 0.01, %v1453_v11  ;;  %v1503_v63 = vmul.f32 0.01, %v1482_v47  ;;  %vm1494_vm5 = vcmp.gt.f32.partialorder %v1453_v11, 0.0  ;;  %vm1495_vm6 = vcmp.gt.f32.partialorder %v1482_v47, 0.0 }
 0x551   : > { %v1510_v13 = vsel %vm1494_vm5, %v1453_v11, %v1502_v62  ;;  %v1511_v14 = vsel %vm1495_vm6, %v1482_v47, %v1503_v63 }
 0x556   : > { %v1456_v48 = vpop.f32.mrf.mxu0  ;;  %v1485_v49 = vpop.f32.mrf.mxu1 }
 0x557   : > { %v1504_v58 = vmul.f32 0.01, %v1456_v48  ;;  %v1505_v59 = vmul.f32 0.01, %v1485_v49  ;;  %vm1496_vm3 = vcmp.gt.f32.partialorder %v1456_v48, 0.0  ;;  %vm1497_vm4 = vcmp.gt.f32.partialorder %v1485_v49, 0.0 }
 0x559   : > { %v1512_v2 = vsel %vm1496_vm3, %v1456_v48, %v1504_v58  ;;  %v1513_v7 = vsel %vm1497_vm4, %v1485_v49, %v1505_v59 }
 0x55e   : > { %v1459_v50 = vpop.f32.mrf.mxu0  ;;  %v1488_v51 = vpop.f32.mrf.mxu1 }
 0x55f   : > { %v1506_v52 = vmul.f32 0.01, %v1459_v50  ;;  %v1507_v53 = vmul.f32 0.01, %v1488_v51  ;;  %vm1498_vm1 = vcmp.gt.f32.partialorder %v1459_v50, 0.0  ;;  %vm1499_vm2 = vcmp.gt.f32.partialorder %v1488_v51, 0.0 }
 0x561   : > { %v1514_v0 = vsel %vm1498_vm1, %v1459_v50, %v1506_v52  ;;  %v1515_v1 = vsel %vm1499_vm2, %v1488_v51, %v1507_v53 }
 0x566   : > { %v1462_v54 = vpop.f32.mrf.mxu0  ;;  %v1491_v55 = vpop.f32.mrf.mxu1 }
 0x567   : > { %vm1500_vm0 = vcmp.gt.f32.partialorder %v1462_v54, 0.0  ;;  %v1508_v56 = vmul.f32 0.01, %v1462_v54  ;;  %vm1501_vm15 = vcmp.gt.f32.partialorder %v1491_v55, 0.0  ;;  %v1509_v57 = vmul.f32 0.01, %v1491_v55 }
 0x569   : > { %v1516_v60 = vsel %vm1500_vm0, %v1462_v54, %v1508_v56  ;;  %v1517_v61 = vsel %vm1501_vm15, %v1491_v55, %v1509_v57 }
 0x56a   : > { %1535 = vmatpush.msrb.mxu2 %v1516_v60  ;;  %1555 = vmatpush.msrb.mxu3 %v1517_v61 }
 0x56c   : > { %1536 = vmatpush.msrb.mxu2 %v1514_v0  ;;  %1556 = vmatpush.msrb.mxu3 %v1515_v1 }
 0x56e   : > { %1537 = vmatpush.msrb.mxu2 %v1512_v2  ;;  %1557 = vmatpush.msrb.mxu3 %v1513_v7 }
 0x570   : > { %1538 = vmatpush.msrb.mxu2 %v1510_v13  ;;  %1558 = vmatpush.msrb.mxu3 %v1511_v14 }
 0x571   : > { %1815 = vmatmul.msk.f32.vlgmr.msrb.gmra.mxu2 %vm456_vm10, %v1814_v12  ;;  %1816 = vmatmul.msk.f32.vlgmr.msrb.gmra.mxu3 %vm456_vm10, %v1814_v12 }
 0x5f4   : > { %v1540_v15 = vpop.f32.mrf.mxu2  ;;  %v1560_v17 = vpop.f32.mrf.mxu3 }
 0x5f5   : > { %v1563_v18 = vadd.f32 %v1540_v15, %v1417_v9  ;;  %v1564_v19 = vadd.f32 %v1560_v17, %v1418_v10 }
 0x5f7   : > { %v1568_v21 = vadd.f32 %v1566_v16, %v1564_v19  ;;  %v1567_v22 = vadd.f32 %v1566_v16, %v1563_v18 }
 0x5f9   : > { %v1571_v23 = vrot.slane %v1568_v21, 7 }
 0x5fb   : > { %v1573_v24 = vsel %vm1572_vm7, %v1567_v22, %v1571_v23 }
 0x5fc   : > { %1579 = vst.msk [vmem:[%s234_s26] sm:$0x3] %vm1577_vm8, %v1573_v24 }
 0x5fd PF: > { %s15_s19 = sadd.s32 1, %s1874_s19   ;;  %s2333_s17 = smov %s1870_s18 }
 0x5fe   : > { %p12_p5 = scmp.ge.s32.totalorder %s15_s19, 4   ;;  %s2334_s18 = smov %s2336_s0 }
 0x600   :  { %14 = sbr.rel (!%p12_p5) target bundleno = 2 (0x2), region = 82 }

// kernel: res_dense_net_forward.5
= control target key start
LH: loop header
LB: loop body
LE: loop exit
PB: predicated region body
PF: predicated region fallthrough
CT: control target
= control target key end

     0   :  { %13 = vsyncpa [#allocation3], 0  ;;  %s1326_s27 = smov 0   ;;  %s1328_s28 = smov 0   ;;  %s1613_s0 = inlined_call_operand.vmem [shape: f32[6], index: 0, kind: input, shape index: {}]   ;;  %s1614_s1 = inlined_call_operand.vmem [shape: bf16[2,9,256], index: 1, kind: input, shape index: {}]   ;;  %s1615_s2 = inlined_call_operand.vmem [shape: f32[2,1,256], index: 2, kind: input, shape index: {}]   ;;  %s1616_s3 = inlined_call_operand.vmem [shape: bf16[2,32,256], index: 3, kind: input, shape index: {}]   ;;  %s1617_s4 = inlined_call_operand.vmem [shape: f32[64,9], index: 4, kind: input, shape index: {}]   ;;  %s1618_s5 = inlined_call_operand.vmem [shape: f32[64,1], index: 5, kind: input, shape index: {}]   ;;  %s1619_s6 = inlined_call_operand.vmem [shape: f32[32,1], index: 6, kind: input, shape index: {}]   ;;  %s1620_s7 = inlined_call_operand.vmem [shape: f32[32,1], index: 7, kind: input, shape index: {}]   ;;  %s1621_s8 = inlined_call_operand.vmem [shape: f32[2,32,256], index: 8, kind: output, shape index: {}]  }
   0x1   :  { %s1330_s29 = smov 0  }
   0x2 LB: > { %s1124_s30 = sadd.s32 4294967295, %s1275_s29   ;;  %s31_s9 = sadd.s32 1, %s1271_s28  ;;  %s1275_s29 = sphi %s1330_s29, %s19_s29   ;;  %s1271_s28 = sphi %s1328_s28, %s1625_s28   ;;  %s1267_s27 = sphi %s1326_s27, %s1624_s27  }
   0x3   : > { %p33_p0 = scmp.ge.s32.totalorder %s31_s9, 2  ;;  %p1126_p1 = scmp.ge.s32.totalorder %s1275_s29, 1 }
   0x4   : > { %p253_p2 = scmp.lt.s32.totalorder %s1275_s29, 3  ;;  %p1181_p4 = scmp.eq.s32.totalorder %s1124_s30, 0 }
   0x5   : > { %s1627_s9 = smov (%p33_p0, %s31_s9), 0  ;;  %s265_s12 = sshll.u32 %s1613_s0, 4  ;;  %s266_s12 = int_to_ptr.vmem [resolvable:$true] %s265_s12 }
   0x6   : > { %p254_p3 = pnand %p1126_p1, %p253_p2  ;;  %s1277_s13 = smov [#allocation2]  }
   0x8   : > { %p1177_p5 = pneg %p254_p3  ;;  %328 = sbr.rel (%p254_p3) target bundleno = 275 (0x113), region = 52 }
   0xa   : > { %p1178_p6 = pnand %p1181_p4, %p1177_p5 }
   0xc   : > { %1180 = dma.vmem_to_smem (!%p1178_p6), %s266_s12, 16, %s1277_s13, [#allocation3]  }
   0xd   : > { %1262 = dma.done.wait (%p1181_p4), [#allocation3], 16  }
   0xe   : > { %1264 = vsyncadd (%p1181_p4), [#allocation3], 4294967280 }
   0xf   : > { %335 = sfence }
  0x10   : > { %v703_v0 = vld [vmem:[%s1620_s7 + $0x8] sm:$0xff]  ;;  %v672_v1 = vld [vmem:[%s1619_s6 + $0x10] sm:$0xff]  ;;  %v670_v2 = vld [vmem:[%s1619_s6] sm:$0xff]  ;;  %p390_p7 = scmp.lt.s32.totalorder %s1267_s27, 1  ;;  %v1278_v3 = vmov 0   ;;  %vm521_vm0 = vcmask 1040384  }
  0x11   : > { %1213 = vset.pattern.permute.xlu2 %v1278_v3  ;;  %1212 = vset.pattern.permute.xlu1 %v1278_v3  ;;  %v673_v8 = vld [vmem:[%s1619_s6 + $0x18] sm:$0xff]  ;;  %v702_v9 = vld [vmem:[%s1620_s7] sm:$0xff]  ;;  %v671_v11 = vld [vmem:[%s1619_s6 + $0x8] sm:$0xff]  ;;  %vm496_vm1 = vcmask 72704   ;;  %v1279_v42 = vmov 32.0   ;;  %s1141_s16 = sld [smem:[#allocation2 + $0x4]] }
  0x12   : > { %1211 = vset.pattern.permute.xlu0 %v1278_v3  ;;  %713 = vperm.xlu2 %1213, %v703_v0   ;;  %s1629_s27 = smov (!%p390_p7, %s1267_s27), 1  ;;  %v440_v13 = vld [vmem:[%s1617_s4] sm:$0xff]  ;;  %v705_v15 = vld [vmem:[%s1620_s7 + $0x18] sm:$0xff]  ;;  %v704_v17 = vld [vmem:[%s1620_s7 + $0x10] sm:$0xff]  ;;  %1214 = vrcp.f32 %v1279_v42  ;;  %s1142_s18 = sld [smem:[#allocation2 + $0x5]] }
  0x13   : > { %686 = vperm.xlu1 %1212, %v672_v1   ;;  %676 = vperm.xlu0 %1211, %v670_v2   ;;  %s1166_s20 = sshll.u32 %s1629_s27, 4  ;;  %v444_v14 = vld [vmem:[%s1617_s4 + $0x20] sm:$0xff]  ;;  %v441_v18 = vld [vmem:[%s1617_s4 + $0x8] sm:$0xff]  ;;  %v450_v20 = vld [vmem:[%s1618_s5 + $0x10] sm:$0xff]  ;;  %s1167_s12 = sshll.u32 %s1629_s27, 5 }
  0x14   : > { %s397_s23 = scalar_lea.vmem %s1614_s1, %s1166_s20  ;;  %v448_v16 = vld [vmem:[%s1618_s5] sm:$0xff]  ;;  %v445_v19 = vld [vmem:[%s1617_s4 + $0x28] sm:$0xff]  ;;  %v451_v21 = vld [vmem:[%s1618_s5 + $0x18] sm:$0xff]  ;;  %s416_s15 = scalar_lea.vmem %s1616_s3, %s1167_s12 }
  0x15   : > { %v435_v4 = vld [vmem:[%s397_s23 + $0x8] sm:$0x11]  ;;  %v434_v5 = vld [vmem:[%s397_s23] sm:$0xff]  ;;  %v442_v23 = vld [vmem:[%s1617_s4 + $0x10] sm:$0xff]  ;;  %s1133_s17 = sshll.u32 %s1629_s27, 1  ;;  %s1490_s22 = sld [smem:[#allocation2 + $0x1]] }
  0x16   : > { %v438_v6 = vunpack.c.l.bf16 %v435_v4  ;;  %v439_v7 = vunpack.c.h.bf16 %v435_v4  ;;  %v436_v10 = vunpack.c.l.bf16 %v434_v5  ;;  %v437_v12 = vunpack.c.h.bf16 %v434_v5  ;;  %v449_v22 = vld [vmem:[%s1618_s5 + $0x8] sm:$0xff]  ;;  %v446_v24 = vld [vmem:[%s1617_s4 + $0x30] sm:$0xff]  ;;  %v452_v27 = vld [vmem:[%s1618_s5 + $0x20] sm:$0xff]  ;;  %s406_s21 = scalar_lea.vmem %s1615_s2, %s1133_s17  ;;  %s1492_s23 = sld [smem:[#allocation2]] }
  0x17   : > { %v453_v25 = vld [vmem:[%s1618_s5 + $0x28] sm:$0xff]  ;;  %v454_v26 = vld [vmem:[%s1618_s5 + $0x30] sm:$0xff]  ;;  %v443_v28 = vld [vmem:[%s1617_s4 + $0x18] sm:$0xff]  ;;  %s1494_s24 = sld [smem:[#allocation2 + $0x3]]  ;;  %s1168_s26 = sshll.u32 %s1629_s27, 6 }
  0x18   : > { %1143 = vmatpush.msk.msra.mxu0 %vm521_vm0, %v438_v6  ;;  %1169 = vmatpush.msk.msra.mxu2 %vm521_vm0, %v438_v6  ;;  %v447_v29 = vld [vmem:[%s1617_s4 + $0x38] sm:$0xff]  ;;  %v658_v33 = vld [vmem:[%s416_s15] sm:$0xff]  ;;  %v659_v35 = vld [vmem:[%s416_s15 + $0x8] sm:$0xff]  ;;  %v1215_v58 = vpop.eup %1214  ;;  %s1497_s25 = sld [smem:[#allocation2 + $0x2]]  ;;  %s426_s27 = scalar_lea.vmem %s1621_s8, %s1168_s26 }
  0x19   : > { %1152 = vmatpush.msk.msra.mxu1 %vm521_vm0, %v439_v7  ;;  %1171 = vmatpush.msk.msra.mxu3 %vm521_vm0, %v439_v7  ;;  %v455_v30 = vld [vmem:[%s1618_s5 + $0x38] sm:$0xff]  ;;  %v662_v36 = vunpack.c.l.bf16 %v658_v33  ;;  %v663_v37 = vunpack.c.h.bf16 %v658_v33  ;;  %v664_v38 = vunpack.c.l.bf16 %v659_v35  ;;  %v665_v39 = vunpack.c.h.bf16 %v659_v35  ;;  %v660_v43 = vld [vmem:[%s416_s15 + $0x10] sm:$0xff] }
  0x1a   : > { %691 = vperm.xlu2 %1213, %v673_v8   ;;  %543 = vmatpush.msra.mxu0 %v436_v10  ;;  %v661_v40 = vld [vmem:[%s416_s15 + $0x18] sm:$0xff]  ;;  %v666_v53 = vunpack.c.l.bf16 %v660_v43  ;;  %v667_v54 = vunpack.c.h.bf16 %v660_v43  ;;  %v782_v6 = vmul.f32 32.0, %v1215_v58  ;;  %vm786_vm10 = vweird.f32 %v1215_v58 }
  0x1b   : > { %708 = vperm.xlu1 %1212, %v702_v9   ;;  %681 = vperm.xlu0 %1211, %v671_v11   ;;  %v668_v47 = vunpack.c.l.bf16 %v661_v40  ;;  %v669_v48 = vunpack.c.h.bf16 %v661_v40 }
  0x1c   : > { %1170 = vmatpush.msra.mxu2 %v436_v10  ;;  %584 = vmatpush.msra.mxu1 %v437_v12 }
  0x1d   : > { %1172 = vmatpush.msra.mxu3 %v437_v12  ;;  %1144 = vmatmul.msk.f32.vlgmr.msra.gmra.mxu0 %vm496_vm1, %v440_v13 }
  0x1e   : > { %1148 = vmatmul.msk.f32.vlgmr.msra.gmra.mxu2 %vm496_vm1, %v444_v14  ;;  %1153 = vmatmul.msk.f32.vlgmr.msra.gmra.mxu1 %vm496_vm1, %v440_v13 }
  0x1f   : > { %1157 = vmatmul.msk.f32.vlgmr.msra.gmra.mxu3 %vm496_vm1, %v444_v14 }
  0x22   : > { %458 = vperm.xlu2 %1213, %v448_v16  }
  0x23   : > { %723 = vperm.xlu1 %1212, %v705_v15   ;;  %718 = vperm.xlu0 %1211, %v704_v17  }
  0x25   : > { %1145 = vmatmul.msk.f32.gmra.mxu0 %vm496_vm1, %v441_v18 }
  0x26   : > { %1149 = vmatmul.msk.f32.gmra.mxu2 %vm496_vm1, %v445_v19  ;;  %1154 = vmatmul.msk.f32.gmra.mxu1 %vm496_vm1, %v441_v18 }
  0x27   : > { %1158 = vmatmul.msk.f32.gmra.mxu3 %vm496_vm1, %v445_v19 }
  0x2a   : > { %473 = vperm.xlu2 %1213, %v451_v21  }
  0x2b   : > { %468 = vperm.xlu1 %1212, %v450_v20   ;;  %463 = vperm.xlu0 %1211, %v449_v22  }
  0x2d   : > { %1146 = vmatmul.msk.f32.gmra.mxu0 %vm496_vm1, %v442_v23 }
  0x2e   : > { %1150 = vmatmul.msk.f32.gmra.mxu2 %vm496_vm1, %v446_v24  ;;  %1155 = vmatmul.msk.f32.gmra.mxu1 %vm496_vm1, %v442_v23 }
  0x2f   : > { %1159 = vmatmul.msk.f32.gmra.mxu3 %vm496_vm1, %v446_v24 }
  0x32   : > { %488 = vperm.xlu2 %1213, %v454_v26   ;;  %v783_v26 = vsub.f32 1.0, %v782_v6 }
  0x33   : > { %483 = vperm.xlu1 %1212, %v453_v25   ;;  %478 = vperm.xlu0 %1211, %v452_v27  }
  0x35   : > { %1147 = vmatmul.msk.f32.gmra.mxu0 %vm496_vm1, %v443_v28 }
  0x36   : > { %1151 = vmatmul.msk.f32.gmra.mxu2 %vm496_vm1, %v447_v29  ;;  %1156 = vmatmul.msk.f32.gmra.mxu1 %vm496_vm1, %v443_v28 }
  0x37   : > { %1160 = vmatmul.msk.f32.gmra.mxu3 %vm496_vm1, %v447_v29 }
  0x3b   : > { %493 = vperm.xlu0 %1211, %v455_v30  }
  0x6c   : > { %v714_v34 = vpop.permute.xlu2 %713 }
  0x74   : > { %v692_v57 = vpop.permute.xlu2 %691 }
  0x75   : > { %v700_v59 = vmul.f32 %v692_v57, %v668_v47  ;;  %v701_v60 = vmul.f32 %v692_v57, %v669_v48 }
  0x85   : > { %v687_v31 = vpop.permute.xlu1 %686  ;;  %v677_v32 = vpop.permute.xlu0 %676 }
  0x86   : > { %v694_v44 = vmul.f32 %v677_v32, %v662_v36  ;;  %v695_v45 = vmul.f32 %v677_v32, %v663_v37  ;;  %v698_v1 = vmul.f32 %v687_v31, %v666_v53  ;;  %v699_v2 = vmul.f32 %v687_v31, %v667_v54 }
  0x87   : > { %v784_v31 = vmul.f32 %v1215_v58, %v783_v26 }
  0x89   : > { %v785_v36 = vadd.f32 %v1215_v58, %v784_v31 }
  0x8b   : > { %v787_v42 = vsel %vm786_vm10, %v1215_v58, %v785_v36 }
  0x8d   : > { %v709_v41 = vpop.permute.xlu1 %708  ;;  %v682_v46 = vpop.permute.xlu0 %681 }
  0x8e   : > { %v696_v49 = vmul.f32 %v682_v46, %v664_v38  ;;  %v697_v50 = vmul.f32 %v682_v46, %v665_v39  ;;  %v726_v51 = vadd.f32 %v709_v41, %v694_v44  ;;  %v727_v52 = vadd.f32 %v709_v41, %v695_v45 }
  0x8f   : > { %v1280_v39 = vmov 31.0  }
  0x90   : > { %v728_v55 = vadd.f32 %v714_v34, %v696_v49  ;;  %v729_v56 = vadd.f32 %v714_v34, %v697_v50  ;;  %v742_v63 = vmul.f32 0.01, %v726_v51  ;;  %v743_v0 = vmul.f32 0.01, %v727_v52 }
  0x91   : > { %vm734_vm4 = vcmp.gt.f32.partialorder %v726_v51, 0.0  ;;  %vm735_vm5 = vcmp.gt.f32.partialorder %v727_v52, 0.0  ;;  %1216 = vrcp.f32 %v1280_v39  ;;  %v758_v39 = vld [vmem:[%s406_s21] sm:$0x3] }
  0x92   : > { %v744_v61 = vmul.f32 0.01, %v728_v55  ;;  %v745_v62 = vmul.f32 0.01, %v729_v56  ;;  %vm736_vm2 = vcmp.gt.f32.partialorder %v728_v55, 0.0  ;;  %vm737_vm3 = vcmp.gt.f32.partialorder %v729_v56, 0.0 }
  0x93   : > { %v1458_v12 = vsel %vm734_vm4, %v726_v51, %v742_v63  ;;  %v1460_v13 = vsel %vm735_vm5, %v727_v52, %v743_v0 }
  0x94   : > { %v1454_v8 = vsel %vm736_vm2, %v728_v55, %v744_v61  ;;  %v1456_v9 = vsel %vm737_vm3, %v729_v56, %v745_v62 }
  0x95   : > { %v724_v3 = vpop.permute.xlu1 %723  ;;  %v719_v7 = vpop.permute.xlu0 %718  ;;  %v763_v18 = vadd.f32 %v1454_v8, %v1458_v12  ;;  %v772_v19 = vadd.f32 %v1456_v9, %v1460_v13 }
  0x96   : > { %v732_v4 = vadd.f32 %v724_v3, %v700_v59  ;;  %v733_v5 = vadd.f32 %v724_v3, %v701_v60  ;;  %v730_v10 = vadd.f32 %v719_v7, %v698_v1  ;;  %v731_v11 = vadd.f32 %v719_v7, %v699_v2 }
  0x97   : > { %v1217_v47 = vpop.eup %1216 }
  0x98   : > { %v748_v14 = vmul.f32 0.01, %v732_v4  ;;  %v749_v15 = vmul.f32 0.01, %v733_v5  ;;  %vm738_vm6 = vcmp.gt.f32.partialorder %v730_v10, 0.0  ;;  %vm739_vm7 = vcmp.gt.f32.partialorder %v731_v11, 0.0 }
  0x99   : > { %v746_v16 = vmul.f32 0.01, %v730_v10  ;;  %v747_v17 = vmul.f32 0.01, %v731_v11  ;;  %vm740_vm8 = vcmp.gt.f32.partialorder %v732_v4, 0.0  ;;  %vm741_vm9 = vcmp.gt.f32.partialorder %v733_v5, 0.0 }
  0x9a   : > { %v1472_v24 = vsel %vm740_vm8, %v732_v4, %v748_v14  ;;  %v1474_v25 = vsel %vm741_vm9, %v733_v5, %v749_v15  ;;  %v825_v60 = vmul.f32 31.0, %v1217_v47  ;;  %vm829_vm11 = vweird.f32 %v1217_v47 }
  0x9b   : > { %v1466_v20 = vsel %vm738_vm6, %v730_v10, %v746_v16  ;;  %v1468_v21 = vsel %vm739_vm7, %v731_v11, %v747_v17 }
  0x9c   : > { %v764_v22 = vadd.f32 %v763_v18, %v1466_v20  ;;  %v773_v23 = vadd.f32 %v772_v19, %v1468_v21  ;;  %v826_v5 = vsub.f32 1.0, %v825_v60 }
  0x9e   : > { %v765_v27 = vadd.f32 %v764_v22, %v1472_v24  ;;  %v774_v28 = vadd.f32 %v773_v23, %v1474_v25  ;;  %v827_v14 = vmul.f32 %v1217_v47, %v826_v5 }
  0xa0   : > { %v766_v29 = vrot.slane %v765_v27, 4  ;;  %v775_v30 = vrot.slane %v774_v28, 4  ;;  %v828_v19 = vadd.f32 %v1217_v47, %v827_v14 }
  0xa2   : > { %v767_v32 = vadd.f32 %v766_v29, %v765_v27  ;;  %v776_v33 = vadd.f32 %v775_v30, %v774_v28  ;;  %v830_v28 = vsel %vm829_vm11, %v1217_v47, %v828_v19  ;;  %v761_v47 = vstv %s1142_s18 }
  0xa4   : > { %v768_v34 = vrot.slane %v767_v32, 2  ;;  %v777_v35 = vrot.slane %v776_v33, 2 }
  0xa6   : > { %v769_v37 = vadd.f32 %v768_v34, %v767_v32  ;;  %v778_v38 = vadd.f32 %v777_v35, %v776_v33 }
  0xa8   : > { %v770_v40 = vrot.slane %v769_v37, 1  ;;  %v779_v41 = vrot.slane %v778_v38, 1 }
  0xaa   : > { %v771_v43 = vadd.f32 %v770_v40, %v769_v37  ;;  %v780_v44 = vadd.f32 %v779_v41, %v778_v38  ;;  %v545_v37 = vpop.f32.mrf.mxu0  ;;  %v759_v40 = vstv %s1141_s16 }
  0xac   : > { %v788_v45 = vmul.f32 %v787_v42, %v771_v43  ;;  %v789_v46 = vmul.f32 %v787_v42, %v780_v44  ;;  %v760_v44 = vmul.f32 %v759_v40, %v758_v39 }
  0xae   : > { %v790_v48 = vsub.f32 %v1458_v12, %v788_v45  ;;  %v791_v49 = vsub.f32 %v1460_v13, %v789_v46  ;;  %v792_v50 = vsub.f32 %v1454_v8, %v788_v45  ;;  %v793_v51 = vsub.f32 %v1456_v9, %v789_v46 }
  0xaf   : > { %v794_v52 = vsub.f32 %v1466_v20, %v788_v45  ;;  %v795_v53 = vsub.f32 %v1468_v21, %v789_v46  ;;  %v796_v54 = vsub.f32 %v1472_v24, %v788_v45  ;;  %v797_v55 = vsub.f32 %v1474_v25, %v789_v46  ;;  %v586_v46 = vpop.f32.mrf.mxu1 }
  0xb0   : > { %v798_v56 = vmul.f32 %v790_v48, %v790_v48  ;;  %v799_v57 = vmul.f32 %v791_v49, %v791_v49  ;;  %v800_v58 = vmul.f32 %v792_v50, %v792_v50  ;;  %v801_v59 = vmul.f32 %v793_v51, %v793_v51 }
  0xb1   : > { %v802_v61 = vmul.f32 %v794_v52, %v794_v52  ;;  %v803_v62 = vmul.f32 %v795_v53, %v795_v53  ;;  %v804_v1 = vmul.f32 %v796_v54, %v796_v54  ;;  %v805_v2 = vmul.f32 %v797_v55, %v797_v55  ;;  %v557_v54 = vpop.f32.mrf.mxu2  ;;  %v598_v55 = vpop.f32.mrf.mxu3 }
  0xb2   : > { %v806_v63 = vadd.f32 %v800_v58, %v798_v56  ;;  %v815_v0 = vadd.f32 %v801_v59, %v799_v57  ;;  %v762_v51 = vadd.f32 %v761_v47, %v760_v44  ;;  %v888_v53 = vstv %s1490_s22  ;;  %v548_v58 = vpop.f32.mrf.mxu0 }
  0xb3   : > { %v857_v59 = vstv %s1492_s23 }
  0xb4   : > { %v807_v3 = vadd.f32 %v806_v63, %v802_v61  ;;  %v816_v4 = vadd.f32 %v815_v0, %v803_v62  ;;  %v891_v63 = vstv %s1494_s24  ;;  %v896_v5 = vperm.slane %v762_v51, 1 }
  0xb6   : > { %v808_v6 = vadd.f32 %v807_v3, %v804_v1  ;;  %v817_v7 = vadd.f32 %v816_v4, %v805_v2  ;;  %v895_v1 = vperm.slane %v762_v51, 0  ;;  %v464_v3 = vpop.permute.xlu0 %463 }
  0xb7   : > { %v549_v39 = vadd.f32 %v548_v58, %v464_v3 }
  0xb8   : > { %v809_v10 = vrot.slane %v808_v6, 4  ;;  %v818_v11 = vrot.slane %v817_v7, 4 }
  0xb9   : > { %vm612_vm3 = vcmp.gt.f32.partialorder %v549_v39, 0.0 }
  0xba   : > { %v810_v15 = vadd.f32 %v809_v10, %v808_v6  ;;  %v819_v16 = vadd.f32 %v818_v11, %v817_v7  ;;  %v459_v10 = vpop.permute.xlu2 %458  ;;  %v589_v11 = vpop.f32.mrf.mxu1 }
  0xbc   : > { %v811_v17 = vrot.slane %v810_v15, 2  ;;  %v820_v18 = vrot.slane %v819_v16, 2 }
  0xbe   : > { %v812_v22 = vadd.f32 %v811_v17, %v810_v15  ;;  %v821_v23 = vadd.f32 %v820_v18, %v819_v16  ;;  %v479_v40 = vpop.permute.xlu0 %478 }
  0xc0   : > { %v813_v26 = vrot.slane %v812_v22, 1  ;;  %v822_v27 = vrot.slane %v821_v23, 1 }
  0xc2   : > { %v814_v29 = vadd.f32 %v813_v26, %v812_v22  ;;  %v823_v30 = vadd.f32 %v822_v27, %v821_v23  ;;  %v866_v23 = vstv %s1497_s25 }
  0xc4   : > { %v831_v31 = vmul.f32 %v830_v28, %v814_v29  ;;  %v832_v32 = vmul.f32 %v830_v28, %v823_v30  ;;  %v560_v28 = vpop.f32.mrf.mxu2  ;;  %v601_v29 = vpop.f32.mrf.mxu3 }
  0xc6   : > { %1218 = vrsqrt.f32 %v831_v31  ;;  %vm840_vm12 = vcmp.eq.f32.partialorder %v831_v31, inf  ;;  %v843_v56 = vand.u32 2147483648, %v831_v31  ;;  %vm842_vm13 = vcmp.eq.f32.partialorder %v831_v31, 0.0 }
  0xc7   : > { %1220 = vrsqrt.f32 %v832_v32  ;;  %vm852_vm14 = vcmp.eq.f32.partialorder %v832_v32, inf  ;;  %v855_v61 = vand.u32 2147483648, %v832_v32  ;;  %vm854_vm15 = vcmp.eq.f32.partialorder %v832_v32, 0.0 }
  0xcc   : > { %v1219_v33 = vpop.eup %1218 }
  0xcd   : > { %v1221_v34 = vpop.eup %1220  ;;  %v834_v35 = vmul.f32 %v1219_v33, %v831_v31 }
  0xce   : > { %v846_v36 = vmul.f32 %v1221_v34, %v832_v32 }
  0xcf   : > { %v835_v38 = vmul.f32 %v1219_v33, %v834_v35 }
  0xd0   : > { %v847_v41 = vmul.f32 %v1221_v34, %v846_v36 }
  0xd1   : > { %v836_v42 = vmul.f32 0.5, %v835_v38 }
  0xd2   : > { %v848_v43 = vmul.f32 0.5, %v847_v41 }
  0xd3   : > { %v837_v45 = vsub.f32 1.5, %v836_v42  ;;  %v474_v42 = vpop.permute.xlu2 %473 }
  0xd4   : > { %v849_v48 = vsub.f32 1.5, %v848_v43 }
  0xd5   : > { %v838_v49 = vmul.f32 %v1219_v33, %v837_v45  ;;  %v546_v33 = vadd.f32 %v545_v37, %v459_v10  ;;  %v590_v45 = vadd.f32 %v589_v11, %v464_v3  ;;  %v599_v37 = vadd.f32 %v598_v55, %v479_v40 }
  0xd6   : > { %v850_v50 = vmul.f32 %v1221_v34, %v849_v48  ;;  %v587_v34 = vadd.f32 %v586_v46, %v459_v10  ;;  %v592_v48 = vpop.f32.mrf.mxu1 }
  0xd7   : > { %v839_v52 = vmul.f32 %v838_v49, %v831_v31  ;;  %v626_v43 = vmul.f32 0.01, %v546_v33  ;;  %vm610_vm1 = vcmp.gt.f32.partialorder %v546_v33, 0.0  ;;  %v628_v49 = vmul.f32 0.01, %v549_v39 }
  0xd8   : > { %v851_v57 = vmul.f32 %v850_v50, %v832_v32  ;;  %v627_v44 = vmul.f32 0.01, %v587_v34  ;;  %vm611_vm2 = vcmp.gt.f32.partialorder %v587_v34, 0.0  ;;  %v558_v50 = vadd.f32 %v557_v54, %v479_v40 }
  0xd9   : > { %v841_v60 = vsel %vm840_vm12, %v831_v31, %v839_v52  ;;  %v469_v31 = vpop.permute.xlu1 %468  ;;  %vm613_vm4 = vcmp.gt.f32.partialorder %v590_v45, 0.0  ;;  %v635_v54 = vmul.f32 0.01, %v599_v37  ;;  %vm619_vm6 = vcmp.gt.f32.partialorder %v599_v37, 0.0 }
  0xda   : > { %v853_v62 = vsel %vm852_vm14, %v832_v32, %v851_v57  ;;  %v844_v0 = vsel %vm842_vm13, %v843_v56, %v841_v60  ;;  %v551_v32 = vpop.f32.mrf.mxu0  ;;  %v643_v52 = vsel %vm611_vm2, %v587_v34, %v627_v44  ;;  %v563_v56 = vpop.f32.mrf.mxu2  ;;  %vm618_vm5 = vcmp.gt.f32.partialorder %v558_v50, 0.0 }
  0xdb   : > { %v856_v2 = vsel %vm854_vm15, %v855_v61, %v853_v62  ;;  %v889_v4 = vmul.f32 %v888_v53, %v844_v0  ;;  %v858_v16 = vmul.f32 %v857_v59, %v844_v0  ;;  %v604_v57 = vpop.f32.mrf.mxu3  ;;  %v634_v61 = vmul.f32 0.01, %v558_v50 }
  0xdc   : > { %v890_v6 = vmul.f32 %v888_v53, %v856_v2  ;;  %v859_v7 = vmul.f32 %v857_v59, %v856_v2  ;;  %v629_v53 = vmul.f32 0.01, %v590_v45  ;;  %v644_v59 = vsel %vm612_vm3, %v549_v39, %v628_v49 }
  0xdd   : > { %v892_v14 = vadd.f32 %v891_v63, %v889_v4  ;;  %v552_v3 = vadd.f32 %v551_v32, %v469_v31  ;;  %v1512_v10 = vmul.f32 %v1454_v8, %v644_v59 }
  0xde   : > { %v893_v15 = vadd.f32 %v891_v63, %v890_v6  ;;  %v862_v17 = vrot.slane %v859_v7, 7  ;;  %v593_v6 = vadd.f32 %v592_v48, %v469_v31  ;;  %v645_v11 = vsel %vm613_vm4, %v590_v45, %v629_v53  ;;  %v494_v48 = vpop.permute.xlu0 %493 }
  0xdf   : > { %v899_v18 = vsub.f32 %v892_v14, %v895_v1  ;;  %v650_v14 = vsel %vm618_vm5, %v558_v50, %v634_v61  ;;  %vm614_vm9 = vcmp.gt.f32.partialorder %v552_v3, 0.0  ;;  %v1526_v31 = vmul.f32 %v1456_v9, %v645_v11 }
  0xe0   : > { %v900_v19 = vsub.f32 %v893_v15, %v896_v5  ;;  %v863_v22 = vsel %vm521_vm0, %v858_v16, %v862_v17  ;;  %v948_v5 = vmul.f32 %v1460_v13, %v643_v52  ;;  %v489_v16 = vpop.permute.xlu2 %488  ;;  %v651_v17 = vsel %vm619_vm6, %v599_v37, %v635_v54 }
  0xe1   : > { %v865_v26 = vsub.f32 %v762_v51, %v863_v22  ;;  %v901_v27 = vmax.f32 %v899_v18, 0.0  ;;  %v642_v51 = vsel %vm610_vm1, %v546_v33, %v626_v43  ;;  %v484_v60 = vpop.permute.xlu1 %483  ;;  %vm615_vm10 = vcmp.gt.f32.partialorder %v593_v6, 0.0 }
  0xe2   : > { %v902_v30 = vmax.f32 %v900_v19, 0.0  ;;  %v554_v63 = vpop.f32.mrf.mxu0  ;;  %v561_v55 = vadd.f32 %v560_v28, %v484_v60  ;;  %v602_v1 = vadd.f32 %v601_v29, %v484_v60  ;;  %v947_v2 = vmul.f32 %v1458_v12, %v642_v51  ;;  %v595_v19 = vpop.f32.mrf.mxu1 }
  0xe3   : > { %v867_v35 = vsub.f32 %v865_v26, %v866_v23  ;;  %v1162_v36 = vmul.f32 -1.442695, %v901_v27  ;;  %v555_v7 = vadd.f32 %v554_v63, %v474_v42  ;;  %v630_v23 = vmul.f32 0.01, %v552_v3  ;;  %v566_v39 = vpop.f32.mrf.mxu2  ;;  %v607_v40 = vpop.f32.mrf.mxu3 }
  0xe4   : > { %v1163_v38 = vmul.f32 -1.442695, %v902_v30  ;;  %vm620_vm7 = vcmp.gt.f32.partialorder %v561_v55, 0.0  ;;  %v636_v18 = vmul.f32 0.01, %v561_v55  ;;  %vm621_vm8 = vcmp.gt.f32.partialorder %v602_v1, 0.0 }
  0xe5   : > { %v868_v41 = vmax.f32 %v867_v35, 0.0  ;;  %1222 = vpow2.f32 %v1162_v36  ;;  %v637_v22 = vmul.f32 0.01, %v602_v1  ;;  %v1519_v26 = vadd.f32 %v563_v56, %v489_v16 }
  0xe6   : > { %1224 = vpow2.f32 %v1163_v38  ;;  %v631_v27 = vmul.f32 0.01, %v593_v6  ;;  %v1521_v28 = vadd.f32 %v604_v57, %v489_v16  ;;  %v632_v29 = vmul.f32 0.01, %v555_v7 }
  0xe7   : > { %v1161_v47 = vmul.f32 -1.442695, %v868_v41  ;;  %vm616_vm11 = vcmp.gt.f32.partialorder %v555_v7, 0.0  ;;  %v1528_v32 = vadd.f32 %v595_v19, %v474_v42  ;;  %v1532_v35 = vadd.f32 %v947_v2, %v650_v14 }
  0xe8   : > { %v1534_v36 = vadd.f32 %v948_v5, %v651_v17  ;;  %v1537_v38 = vsel %vm620_vm7, %v561_v55, %v636_v18  ;;  %v1541_v43 = vsel %vm621_vm8, %v602_v1, %v637_v22  ;;  %v646_v42 = vsel %vm614_vm9, %v552_v3, %v630_v23 }
  0xe9   : > { %1226 = vpow2.f32 %v1161_v47  ;;  %v638_v44 = vmul.f32 0.01, %v1519_v26  ;;  %v647_v47 = vsel %vm615_vm10, %v593_v6, %v631_v27  ;;  %vm622_vm12 = vcmp.gt.f32.partialorder %v1519_v26, 0.0 }
  0xea   : > { %v639_v49 = vmul.f32 0.01, %v1521_v28  ;;  %v648_v50 = vsel %vm616_vm11, %v555_v7, %v632_v29  ;;  %vm623_vm13 = vcmp.gt.f32.partialorder %v1521_v28, 0.0  ;;  %vm617_vm14 = vcmp.gt.f32.partialorder %v1528_v32, 0.0 }
  0xeb   : > { %v1223_v46 = vpop.eup %1222  ;;  %v567_v51 = vadd.f32 %v566_v39, %v494_v48  ;;  %v608_v52 = vadd.f32 %v607_v40, %v494_v48  ;;  %v633_v60 = vmul.f32 0.01, %v1528_v32  ;;  %v957_v40 = vadd.f32 %v1512_v10, %v1537_v38 }
  0xec   : > { %v1225_v58 = vpop.eup %1224  ;;  %v1503_v62 = vadd.f32 1.0, %v1223_v46 }
  0xed   : > { %v1505_v0 = vadd.f32 1.0, %v1225_v58  ;;  %v640_v14 = vmul.f32 0.01, %v567_v51  ;;  %vm624_vm11 = vcmp.gt.f32.partialorder %v567_v51, 0.0  ;;  %v641_v23 = vmul.f32 0.01, %v608_v52 }
  0xee   : > { %1228 = vrcp.f32 %v1503_v62  ;;  %vm916_vm2 = vweird.f32 %v1503_v62  ;;  %v922_v54 = vand.u32 2147483648, %v1503_v62  ;;  %v920_v2 = vand.u32 2147483647, %v1503_v62 }
  0xef   : > { %v1227_v4 = vpop.eup %1226  ;;  %1230 = vrcp.f32 %v1505_v0  ;;  %v937_v57 = vand.u32 2147483648, %v1505_v0  ;;  %v935_v59 = vand.u32 2147483647, %v1505_v0  ;;  %vm931_vm4 = vweird.f32 %v1505_v0 }
  0xf0   : > { %v1516_v15 = vadd.f32 1.0, %v1227_v4  ;;  %vm921_vm10 = vcmp.eq.f32.partialorder %v920_v2, 8.507059e+37  ;;  %v656_v39 = vsel %vm624_vm11, %v567_v51, %v640_v14 }
  0xf1   : > { %v938_v6 = vor.u32 1.1754944e-38, %v937_v57  ;;  %vm936_vm7 = vcmp.eq.f32.partialorder %v935_v59, 8.507059e+37 }
  0xf2   : > { %1232 = vrcp.f32 %v1516_v15  ;;  %v884_v55 = vand.u32 2147483648, %v1516_v15  ;;  %v882_v5 = vand.u32 2147483647, %v1516_v15  ;;  %vm878_vm8 = vweird.f32 %v1516_v15 }
  0xf4   : > { %v1523_v30 = vpop.eup %1228 }
  0xf5   : > { %v1231_v33 = vpop.eup %1230  ;;  %v912_v34 = vmul.f32 %v1523_v30, %v1503_v62  ;;  %vm917_vm15 = vweird.f32 %v1523_v30  ;;  %v923_v62 = vor.u32 1.1754944e-38, %v922_v54 }
  0xf6   : > { %v927_v41 = vmul.f32 %v1231_v33, %v1505_v0  ;;  %vm932_vm1 = vweird.f32 %v1231_v33  ;;  %vm1560_vm3 = vmor %vm916_vm2, %vm917_vm15  ;;  %v885_v0 = vor.u32 1.1754944e-38, %v884_v55  ;;  %vm883_vm15 = vcmp.eq.f32.partialorder %v882_v5, 8.507059e+37 }
  0xf7   : > { %v913_v45 = vsub.f32 1.0, %v912_v34  ;;  %vm933_vm6 = vmor %vm931_vm4, %vm932_vm1  ;;  %vm625_vm1 = vcmp.gt.f32.partialorder %v608_v52, 0.0  ;;  %v649_v34 = vsel %vm617_vm14, %v1528_v32, %v633_v60 }
  0xf8   : > { %v1233_v37 = vpop.eup %1232  ;;  %v928_v46 = vsub.f32 1.0, %v927_v41  ;;  %v951_v41 = vmul.f32 %v1466_v20, %v646_v42  ;;  %v954_v32 = vmul.f32 %v1474_v25, %v649_v34 }
  0xf9   : > { %v874_v53 = vmul.f32 %v1233_v37, %v1516_v15  ;;  %v914_v56 = vmul.f32 %v1523_v30, %v913_v45  ;;  %vm879_vm5 = vweird.f32 %v1233_v37  ;;  %v952_v45 = vmul.f32 %v1468_v21, %v647_v47 }
  0xfa   : > { %v929_v58 = vmul.f32 %v1231_v33, %v928_v46  ;;  %vm880_vm9 = vmor %vm878_vm8, %vm879_vm5 }
  0xfb   : > { %v875_v61 = vsub.f32 1.0, %v874_v53  ;;  %v915_v63 = vadd.f32 %v1523_v30, %v914_v56 }
  0xfc   : > { %v930_v3 = vadd.f32 %v1231_v33, %v929_v58 }
  0xfd   : > { %v876_v4 = vmul.f32 %v1233_v37, %v875_v61  ;;  %v919_v7 = vsel %vm1560_vm3, %v1523_v30, %v915_v63  ;;  %v654_v30 = vsel %vm622_vm12, %v1519_v26, %v638_v44  ;;  %v953_v26 = vmul.f32 %v1472_v24, %v648_v50 }
  0xfe   : > { %v934_v11 = vsel %vm933_vm6, %v1231_v33, %v930_v3  ;;  %v924_v22 = vsel %vm921_vm10, %v923_v62, %v919_v7  ;;  %v655_v33 = vsel %vm623_vm13, %v1521_v28, %v639_v49  ;;  %v958_v28 = vadd.f32 %v1526_v31, %v1541_v43 }
  0xff   : > { %v877_v16 = vadd.f32 %v1233_v37, %v876_v4  ;;  %v939_v17 = vsel %vm936_vm7, %v938_v6, %v934_v11  ;;  %v657_v49 = vsel %vm625_vm1, %v608_v52, %v641_v23  ;;  %v960_v46 = vadd.f32 %v952_v45, %v655_v33 }
 0x100   : > { %v943_v18 = vrot.slane %v939_v17, 7  ;;  %v961_v51 = vadd.f32 %v953_v26, %v656_v39  ;;  %v962_v56 = vadd.f32 %v954_v32, %v657_v49 }
 0x101   : > { %v881_v19 = vsel %vm880_vm9, %v1233_v37, %v877_v16  ;;  %v959_v37 = vadd.f32 %v951_v41, %v654_v30 }
 0x102   : > { %v886_v27 = vsel %vm883_vm15, %v885_v0, %v881_v19  ;;  %v944_v29 = vsel %vm521_vm0, %v924_v22, %v943_v18 }
 0x103   : > { %v946_v15 = vadd.f32 %v944_v29, %v886_v27 }
 0x105   : > { %v964_v44 = vperm.slane %v946_v15, 0  ;;  %v965_v48 = vperm.slane %v946_v15, 1 }
 0x107   : > { %v968_v10 = vmul.f32 %v964_v44, %v1532_v35  ;;  %v969_v38 = vmul.f32 %v965_v48, %v1534_v36  ;;  %v970_v42 = vmul.f32 %v964_v44, %v957_v40  ;;  %v971_v47 = vmul.f32 %v965_v48, %v958_v28 }
 0x108   : > { %v972_v50 = vmul.f32 %v964_v44, %v959_v37  ;;  %v973_v53 = vmul.f32 %v965_v48, %v960_v46  ;;  %v974_v57 = vmul.f32 %v964_v44, %v961_v51  ;;  %v975_v58 = vmul.f32 %v965_v48, %v962_v56 }
 0x109   : > { %v976_v31 = vadd.f32 %v968_v10, %v1458_v12  ;;  %v977_v43 = vadd.f32 %v969_v38, %v1460_v13  ;;  %v978_v52 = vadd.f32 %v970_v42, %v1454_v8  ;;  %v979_v35 = vadd.f32 %v971_v47, %v1456_v9 }
 0x10a   : > { %v980_v36 = vadd.f32 %v972_v50, %v1466_v20  ;;  %v981_v59 = vadd.f32 %v973_v53, %v1468_v21  ;;  %v982_v60 = vadd.f32 %v974_v57, %v1472_v24  ;;  %v983_v12 = vadd.f32 %v975_v58, %v1474_v25 }
 0x10b   : > { %984 = vst [vmem:[%s426_s27] sm:$0xff] %v976_v31 }
 0x10c   : > { %985 = vst [vmem:[%s426_s27 + $0x8] sm:$0xff] %v977_v43 }
 0x10d   : > { %986 = vst [vmem:[%s426_s27 + $0x10] sm:$0xff] %v978_v52 }
 0x10e   : > { %987 = vst [vmem:[%s426_s27 + $0x18] sm:$0xff] %v979_v35 }
 0x10f   : > { %988 = vst [vmem:[%s426_s27 + $0x20] sm:$0xff] %v980_v36 }
 0x110   : > { %989 = vst [vmem:[%s426_s27 + $0x28] sm:$0xff] %v981_v59 }
 0x111   : > { %990 = vst [vmem:[%s426_s27 + $0x30] sm:$0xff] %v982_v60 }
 0x112   : > { %991 = vst [vmem:[%s426_s27 + $0x38] sm:$0xff] %v983_v12 }
 0x113 PF: > { %s19_s29 = sadd.s32 1, %s1275_s29   ;;  %s1624_s27 = smov %s1271_s28 }
 0x114   : > { %p16_p8 = scmp.ge.s32.totalorder %s19_s29, 4   ;;  %s1625_s28 = smov %s1627_s9 }
 0x116   :  { %18 = sbr.rel (!%p16_p8) target bundleno = 2 (0x2), region = 93 }
 0x11b   :  { %1022 = vsyncpa [#allocation3], 1 }
 0x11c   :  { %1024 = vsyncpa [#allocation3 + $0x1], 1 }

</bundles_post_ra>
